<compile_context>
chip_gen: v7x
topology: tpu7x:2x2x1
jax: 0.10.0
libtpu: 0.0.40
codegen_flags: <defaults>
</compile_context>

<pallas_src>
import jax
import jax.numpy as jnp
from jax.experimental import pallas as pl
from jax.experimental.pallas import tpu as pltpu

HIDDEN = 256   # matches nn.Linear(..., 256)
TB = 256       # batch tile: multiple of 128 (v5e MXU) and 256 (v6e/v7x MXU)


def _soft_q_kernel(s_ref, a_ref, w1s_ref, w1a_ref, b1_ref,
                   w2_ref, b2_ref, w3_ref, b3_ref, o_ref):
    # Layer 1 with the concat fused: [s, a] @ w1 == s @ w1s + a @ w1a.
    h1 = (jnp.dot(s_ref[...], w1s_ref[...], preferred_element_type=jnp.float32)
          + jnp.dot(a_ref[...], w1a_ref[...], preferred_element_type=jnp.float32)
          + b1_ref[...])
    h1 = jnp.maximum(h1, 0.0)

    # Layer 2 (256 -> 256): bf16 operands, f32 accumulation, f32 bias/ReLU.
    h2 = jnp.dot(h1.astype(jnp.bfloat16), w2_ref[...],
                 preferred_element_type=jnp.float32) + b2_ref[...]
    h2 = jnp.maximum(h2, 0.0)

    # Layer 3 (256 -> 1): VPU multiply + lane reduction instead of a 1-column
    # MXU matmul (avoids MXU push/drain latency on an almost-empty array).
    y = jnp.sum(h2 * w3_ref[...], axis=-1, keepdims=True) + b3_ref[...]
    o_ref[...] = y.astype(o_ref.dtype)


def soft_q_forward(states, actions, params):
    """states: (B, state_dim), actions: (B, action_dim) -> (B, 1) float32."""
    w1, b1, w2, b2, w3, b3 = params
    B, state_dim = states.shape
    action_dim = actions.shape[1]
    H = w1.shape[1]

    # Pad batch to a multiple of TB; padded zero rows pass harmlessly through
    # the MLP and are sliced off at the end.
    n_tiles = pl.cdiv(B, TB)
    B_pad = n_tiles * TB
    if B_pad != B:
        states = jnp.pad(states, ((0, B_pad - B), (0, 0)))
        actions = jnp.pad(actions, ((0, B_pad - B), (0, 0)))

    # bf16 matmul operands; biases and the final-layer weight stay f32.
    s_bf = states.astype(jnp.bfloat16)
    a_bf = actions.astype(jnp.bfloat16)
    w1s = w1[:state_dim].astype(jnp.bfloat16)      # fused-concat split of w1
    w1a = w1[state_dim:].astype(jnp.bfloat16)
    w2_bf = w2.astype(jnp.bfloat16)
    b1_f = b1.reshape(1, H).astype(jnp.float32)
    b2_f = b2.reshape(1, H).astype(jnp.float32)
    w3_row = w3.reshape(1, H).astype(jnp.float32)  # layer-3 weight as a row
    b3_f = b3.reshape(1, 1).astype(jnp.float32)

    out = pl.pallas_call(
        _soft_q_kernel,
        out_shape=jax.ShapeDtypeStruct((B_pad, 1), jnp.float32),
        grid=(n_tiles,),
        in_specs=[
            pl.BlockSpec((TB, state_dim), lambda i: (i, 0)),    # states tile
            pl.BlockSpec((TB, action_dim), lambda i: (i, 0)),   # actions tile
            pl.BlockSpec((state_dim, H), lambda i: (0, 0)),     # w1 state part
            pl.BlockSpec((action_dim, H), lambda i: (0, 0)),    # w1 action part
            pl.BlockSpec((1, H), lambda i: (0, 0)),             # b1
            pl.BlockSpec((H, H), lambda i: (0, 0)),             # w2
            pl.BlockSpec((1, H), lambda i: (0, 0)),             # b2
            pl.BlockSpec((1, H), lambda i: (0, 0)),             # w3 row
            pl.BlockSpec((1, 1), lambda i: (0, 0)),             # b3
        ],
        # (TB, 1) is a narrow-lane store, but output bytes are tiny relative
        # to the (resident) weight traffic, so this is acceptable here.
        out_specs=pl.BlockSpec((TB, 1), lambda i: (i, 0)),
        compiler_params=pltpu.CompilerParams(
            dimension_semantics=("parallel",)),
    )(s_bf, a_bf, w1s, w1a, b1_f, w2_bf, b2_f, w3_row, b3_f)

    return out[:B]


def init_params(key, state_dim, action_dim, hidden=HIDDEN):
    """Deterministic synthetic parameters (PyTorch-like uniform fan-in init)."""
    in_dim = state_dim + action_dim
    ks = jax.random.split(key, 6)

    def lin(kw, kb, fan_in, fan_out):
        bound = 1.0 / jnp.sqrt(fan_in)
        w = jax.random.uniform(kw, (fan_in, fan_out), jnp.float32, -bound, bound)
        b = jax.random.uniform(kb, (1, fan_out), jnp.float32, -bound, bound)
        return w, b

    w1, b1 = lin(ks[0], ks[1], in_dim, hidden)
    w2, b2 = lin(ks[2], ks[3], hidden, hidden)
    w3, b3 = lin(ks[4], ks[5], hidden, 1)
    return (w1, b1, w2, b2, w3, b3)


if __name__ == "__main__":
    state_dim, action_dim, batch = 8, 4, 2

    key = jax.random.PRNGKey(0)
    k_params, k_states, k_actions = jax.random.split(key, 3)

    params = init_params(k_params, state_dim, action_dim)
    states = jax.random.normal(k_states, (batch, state_dim), jnp.float32)
    actions = jax.random.normal(k_actions, (batch, action_dim), jnp.float32)

    out = soft_q_forward(states, actions, params)
    jax.block_until_ready(out)
    assert out.shape == (batch, 1)

    w1, b1, w2, b2, w3, b3 = params
    x = jnp.concatenate([states, actions], axis=1)

    # bf16-matched reference (same matmul-input precision as the kernel).
    h1 = jnp.maximum(
        jnp.dot(x.astype(jnp.bfloat16), w1.astype(jnp.bfloat16),
                preferred_element_type=jnp.float32) + b1, 0.0)
    h2 = jnp.maximum(
        jnp.dot(h1.astype(jnp.bfloat16), w2.astype(jnp.bfloat16),
                preferred_element_type=jnp.float32) + b2, 0.0)
    ref_bf16 = jnp.sum(h2 * w3.reshape(1, -1), axis=-1, keepdims=True) + b3
    assert jnp.allclose(out, ref_bf16, atol=1e-3, rtol=1e-3)

    # Full-f32 semantic reference: bf16 matmul inputs cost a small tolerance.
    ref = jnp.maximum(x @ w1 + b1, 0.0)
    ref = jnp.maximum(ref @ w2 + b2, 0.0)
    ref = ref @ w3 + b3
    assert jnp.allclose(out, ref, atol=5e-2, rtol=5e-2)

    print("KERNEL_OK")
</pallas_src>

<mosaic_0001>
module attributes {stable_mosaic.version = 11 : i64} {
  func.func @_soft_q_kernel(%arg0: i32, %arg1: memref<256x8xbf16, #tpu.memory_space<vmem>>, %arg2: memref<256x4xbf16, #tpu.memory_space<vmem>>, %arg3: memref<8x256xbf16, #tpu.memory_space<vmem>>, %arg4: memref<4x256xbf16, #tpu.memory_space<vmem>>, %arg5: memref<1x256xf32, #tpu.memory_space<vmem>>, %arg6: memref<256x256xbf16, #tpu.memory_space<vmem>>, %arg7: memref<1x256xf32, #tpu.memory_space<vmem>>, %arg8: memref<1x256xf32, #tpu.memory_space<vmem>>, %arg9: memref<1x1xf32, #tpu.memory_space<vmem>>, %arg10: memref<256x1xf32, #tpu.memory_space<vmem>>) attributes {dimension_semantics = [#tpu.dimension_semantics<parallel>], iteration_bounds = array<i64: 1>, scalar_prefetch = 0 : i64, scratch_operands = 0 : i64, tpu.core_type = #tpu.core_type<tc>, window_params = [{transform_indices = @transform_0, window_bounds = array<i64: 256, 8>}, {transform_indices = @transform_1, window_bounds = array<i64: 256, 4>}, {pipeline_mode = #tpu.pipeline_mode<synchronous>, transform_indices = @transform_2, window_bounds = array<i64: 8, 256>}, {pipeline_mode = #tpu.pipeline_mode<synchronous>, transform_indices = @transform_3, window_bounds = array<i64: 4, 256>}, {pipeline_mode = #tpu.pipeline_mode<synchronous>, transform_indices = @transform_4, window_bounds = array<i64: 1, 256>}, {pipeline_mode = #tpu.pipeline_mode<synchronous>, transform_indices = @transform_5, window_bounds = array<i64: 256, 256>}, {pipeline_mode = #tpu.pipeline_mode<synchronous>, transform_indices = @transform_6, window_bounds = array<i64: 1, 256>}, {pipeline_mode = #tpu.pipeline_mode<synchronous>, transform_indices = @transform_7, window_bounds = array<i64: 1, 256>}, {pipeline_mode = #tpu.pipeline_mode<synchronous>, transform_indices = @transform_8, window_bounds = array<i64: 1, 1>}, {transform_indices = @transform_9, window_bounds = array<i64: 256, 1>}]} {
    %c0 = arith.constant 0 : index
    %c0_0 = arith.constant 0 : index
    %0 = vector.load %arg1[%c0, %c0_0] : memref<256x8xbf16, #tpu.memory_space<vmem>>, vector<256x8xbf16>
    %c0_1 = arith.constant 0 : index
    %c0_2 = arith.constant 0 : index
    %1 = vector.load %arg3[%c0_1, %c0_2] : memref<8x256xbf16, #tpu.memory_space<vmem>>, vector<8x256xbf16>
    %cst = arith.constant dense<0.000000e+00> : vector<256x256xf32>
    %2 = tpu.matmul %0, %1, %cst {dimension_numbers = #tpu.dot_dimension_numbers<[1], [0], [0], [1], [0, 0, 1, 1], [], []>} : vector<256x8xbf16>, vector<8x256xbf16>, vector<256x256xf32> -> vector<256x256xf32>
    %c0_3 = arith.constant 0 : index
    %c0_4 = arith.constant 0 : index
    %3 = vector.load %arg2[%c0_3, %c0_4] : memref<256x4xbf16, #tpu.memory_space<vmem>>, vector<256x4xbf16>
    %c0_5 = arith.constant 0 : index
    %c0_6 = arith.constant 0 : index
    %4 = vector.load %arg4[%c0_5, %c0_6] : memref<4x256xbf16, #tpu.memory_space<vmem>>, vector<4x256xbf16>
    %cst_7 = arith.constant dense<0.000000e+00> : vector<256x256xf32>
    %5 = tpu.matmul %3, %4, %cst_7 {dimension_numbers = #tpu.dot_dimension_numbers<[1], [0], [0], [1], [0, 0, 1, 1], [], []>} : vector<256x4xbf16>, vector<4x256xbf16>, vector<256x256xf32> -> vector<256x256xf32>
    %6 = arith.addf %2, %5 : vector<256x256xf32>
    %c0_8 = arith.constant 0 : index
    %c0_9 = arith.constant 0 : index
    %7 = vector.load %arg5[%c0_8, %c0_9] : memref<1x256xf32, #tpu.memory_space<vmem>>, vector<1x256xf32>
    %8 = vector.broadcast %7 : vector<1x256xf32> to vector<256x256xf32>
    %9 = arith.addf %6, %8 : vector<256x256xf32>
    %cst_10 = arith.constant 0.000000e+00 : f32
    %10 = vector.broadcast %cst_10 : f32 to vector<256x256xf32>
    %11 = arith.maximumf %9, %10 : vector<256x256xf32>
    %12 = arith.truncf %11 : vector<256x256xf32> to vector<256x256xbf16>
    %c0_11 = arith.constant 0 : index
    %c0_12 = arith.constant 0 : index
    %13 = vector.load %arg6[%c0_11, %c0_12] : memref<256x256xbf16, #tpu.memory_space<vmem>>, vector<256x256xbf16>
    %cst_13 = arith.constant dense<0.000000e+00> : vector<256x256xf32>
    %14 = tpu.matmul %12, %13, %cst_13 {dimension_numbers = #tpu.dot_dimension_numbers<[1], [0], [0], [1], [0, 0, 1, 1], [], []>} : vector<256x256xbf16>, vector<256x256xbf16>, vector<256x256xf32> -> vector<256x256xf32>
    %c0_14 = arith.constant 0 : index
    %c0_15 = arith.constant 0 : index
    %15 = vector.load %arg7[%c0_14, %c0_15] : memref<1x256xf32, #tpu.memory_space<vmem>>, vector<1x256xf32>
    %16 = vector.broadcast %15 : vector<1x256xf32> to vector<256x256xf32>
    %17 = arith.addf %14, %16 : vector<256x256xf32>
    %cst_16 = arith.constant 0.000000e+00 : f32
    %18 = vector.broadcast %cst_16 : f32 to vector<256x256xf32>
    %19 = arith.maximumf %17, %18 : vector<256x256xf32>
    %c0_17 = arith.constant 0 : index
    %c0_18 = arith.constant 0 : index
    %20 = vector.load %arg8[%c0_17, %c0_18] : memref<1x256xf32, #tpu.memory_space<vmem>>, vector<1x256xf32>
    %21 = vector.broadcast %20 : vector<1x256xf32> to vector<256x256xf32>
    %22 = arith.mulf %19, %21 : vector<256x256xf32>
    %cst_19 = arith.constant dense<0.000000e+00> : vector<256xf32>
    %23 = vector.multi_reduction <add>, %22, %cst_19 [1] : vector<256x256xf32> to vector<256xf32>
    %24 = vector.shape_cast %23 : vector<256xf32> to vector<256x1xf32>
    %c0_20 = arith.constant 0 : index
    %c0_21 = arith.constant 0 : index
    %25 = vector.load %arg9[%c0_20, %c0_21] : memref<1x1xf32, #tpu.memory_space<vmem>>, vector<1x1xf32>
    %26 = vector.broadcast %25 : vector<1x1xf32> to vector<256x1xf32>
    %27 = arith.addf %24, %26 : vector<256x1xf32>
    %c0_22 = arith.constant 0 : index
    %c0_23 = arith.constant 0 : index
    %28 = vector.load %arg10[%c0_22, %c0_23] : memref<256x1xf32, #tpu.memory_space<vmem>>, vector<256x1xf32>
    tpu.vector_store %arg10[%c0_22, %c0_23], %27 {strides = array<i32>} : memref<256x1xf32, #tpu.memory_space<vmem>>, vector<256x1xf32>,
    return
  }
  func.func @transform_0(%arg0: i32) -> (i32, i32) {
    %c0_i32 = arith.constant 0 : i32
    %c0_i32_0 = arith.constant 0 : i32
    return %arg0, %c0_i32 : i32, i32
  }
  func.func @transform_1(%arg0: i32) -> (i32, i32) {
    %c0_i32 = arith.constant 0 : i32
    %c0_i32_0 = arith.constant 0 : i32
    return %arg0, %c0_i32 : i32, i32
  }
  func.func @transform_2(%arg0: i32) -> (i32, i32) {
    %c0_i32 = arith.constant 0 : i32
    %c0_i32_0 = arith.constant 0 : i32
    %c0_i32_1 = arith.constant 0 : i32
    return %c0_i32, %c0_i32_0 : i32, i32
  }
  func.func @transform_3(%arg0: i32) -> (i32, i32) {
    %c0_i32 = arith.constant 0 : i32
    %c0_i32_0 = arith.constant 0 : i32
    %c0_i32_1 = arith.constant 0 : i32
    return %c0_i32, %c0_i32_0 : i32, i32
  }
  func.func @transform_4(%arg0: i32) -> (i32, i32) {
    %c0_i32 = arith.constant 0 : i32
    %c0_i32_0 = arith.constant 0 : i32
    %c0_i32_1 = arith.constant 0 : i32
    return %c0_i32, %c0_i32_0 : i32, i32
  }
  func.func @transform_5(%arg0: i32) -> (i32, i32) {
    %c0_i32 = arith.constant 0 : i32
    %c0_i32_0 = arith.constant 0 : i32
    %c0_i32_1 = arith.constant 0 : i32
    return %c0_i32, %c0_i32_0 : i32, i32
  }
  func.func @transform_6(%arg0: i32) -> (i32, i32) {
    %c0_i32 = arith.constant 0 : i32
    %c0_i32_0 = arith.constant 0 : i32
    %c0_i32_1 = arith.constant 0 : i32
    return %c0_i32, %c0_i32_0 : i32, i32
  }
  func.func @transform_7(%arg0: i32) -> (i32, i32) {
    %c0_i32 = arith.constant 0 : i32
    %c0_i32_0 = arith.constant 0 : i32
    %c0_i32_1 = arith.constant 0 : i32
    return %c0_i32, %c0_i32_0 : i32, i32
  }
  func.func @transform_8(%arg0: i32) -> (i32, i32) {
    %c0_i32 = arith.constant 0 : i32
    %c0_i32_0 = arith.constant 0 : i32
    %c0_i32_1 = arith.constant 0 : i32
    return %c0_i32, %c0_i32_0 : i32, i32
  }
  func.func @transform_9(%arg0: i32) -> (i32, i32) {
    %c0_i32 = arith.constant 0 : i32
    %c0_i32_0 = arith.constant 0 : i32
    return %arg0, %c0_i32 : i32, i32
  }
}

</mosaic_0001>

<bundles_post_ra>
// kernel: tpu_custom_call.1
= control target key start
LH: loop header
LB: loop body
LE: loop exit
PB: predicated region body
PF: predicated region fallthrough
CT: control target
= control target key end

     0   :  { %vm239_vm0 = vcmask 1041408   ;;  %v1905_v1 = vmov 0   ;;  %vm573_vm1 = vcmask 1043456   ;;  %vm190_vm2 = vcmask 31744   ;;  %s2702_s3 = inlined_call_operand.vmem [shape: bf16[4,256], index: 3, kind: input, shape index: {}]   ;;  %s2703_s1 = inlined_call_operand.vmem [shape: bf16[256,4], index: 1, kind: input, shape index: {}]   ;;  %s2704_s2 = inlined_call_operand.vmem [shape: bf16[8,256], index: 2, kind: input, shape index: {}]   ;;  %s2705_s0 = inlined_call_operand.vmem [shape: bf16[256,8], index: 0, kind: input, shape index: {}]   ;;  %s2706_s5 = inlined_call_operand.vmem [shape: bf16[256,256], index: 5, kind: input, shape index: {}]   ;;  %s2707_s4 = inlined_call_operand.vmem [shape: f32[1,256], index: 4, kind: input, shape index: {}]   ;;  %s2708_s6 = inlined_call_operand.vmem [shape: f32[1,256], index: 6, kind: input, shape index: {}]   ;;  %s2709_s7 = inlined_call_operand.vmem [shape: f32[1,256], index: 7, kind: input, shape index: {}]   ;;  %s2710_s8 = inlined_call_operand.<no memory space> [shape: f32[1,1], index: 8, kind: input, shape index: {}]   ;;  %s2711_s9 = inlined_call_operand.vmem [shape: f32[256,1], index: 9, kind: output, shape index: {}]  }
   0x1   :  { %v1670_v0 = vld.sshfl [vmem:[%s2702_s3] sm:$0x33 pattern:$0x76325410]  ;;  %278 = vmatprep.mubr.bf16.mxu0 %v1905_v1  ;;  %358 = vmatprep.mubr.bf16.mxu1 %v1905_v1  ;;  %v1826_v9 = vld [vmem:[%s2703_s1 + $0x8] sm:$0xff]   ;;  %v1827_v11 = vld [vmem:[%s2703_s1 + $0x10] sm:$0xff]  }
   0x2   :  { %v189_v2 = vcombine.high %v1670_v0, %v1670_v0  ;;  %v241_v3 = vsel %vm239_vm0, %v1670_v0, 0  ;;  %v67_v4 = vld [vmem:[%s2704_s2] sm:$0xff]  ;;  %v1843_v12 = vld [vmem:[%s2703_s1 + $0x48] sm:$0xff]   ;;  %v1828_v13 = vld [vmem:[%s2703_s1 + $0x18] sm:$0xff]   ;;  %vm524_vm3 = vcmask 64512   ;;  %vm1617_vm4 = vcmask 7168  }
   0x3   :  { %v1705_v5 = vcombine.high %v67_v4, %v67_v4  ;;  %v1704_v6 = vcombine.low %v67_v4, %v67_v4  ;;  %v1823_v7 = vld [vmem:[%s2703_s1] sm:$0xff]   ;;  %v1845_v14 = vld [vmem:[%s2703_s1 + $0x50] sm:$0xff]   ;;  %v1847_v16 = vld [vmem:[%s2703_s1 + $0x58] sm:$0xff]  }
   0x4   :  { %1671 = vmatprep.subr.msk.bf16.mxu0 %vm239_vm0, %v189_v2  ;;  %1756 = vmatprep.subr.msk.bf16.mxu1 %vm239_vm0, %v189_v2  ;;  %v1841_v10 = vld [vmem:[%s2703_s1 + $0x40] sm:$0xff]   ;;  %v1830_v17 = vld [vmem:[%s2703_s1 + $0x28] sm:$0xff]   ;;  %v1831_v19 = vld [vmem:[%s2703_s1 + $0x30] sm:$0xff]  }
   0x5   :  { %247 = vmatpush1.bf16.msra.mxu0 %v241_v3  ;;  %1757 = vmatpush1.bf16.msra.mxu1 %v241_v3  ;;  %v575_v8 = vsel %vm573_vm1, %v1704_v6, 0  ;;  %v1829_v15 = vld [vmem:[%s2703_s1 + $0x20] sm:$0xff]   ;;  %v1851_v20 = vld [vmem:[%s2703_s1 + $0x68] sm:$0xff]   ;;  %v1832_v21 = vld [vmem:[%s2703_s1 + $0x38] sm:$0xff]  }
   0x6   :  { %1706 = vmatprep.subr.msk.bf16.mxu0 %vm573_vm1, %v1705_v5  ;;  %v1849_v18 = vld [vmem:[%s2703_s1 + $0x60] sm:$0xff]   ;;  %v1853_v22 = vld [vmem:[%s2703_s1 + $0x70] sm:$0xff]   ;;  %v1855_v29 = vld [vmem:[%s2703_s1 + $0x78] sm:$0xff]  }
   0x7   :  { %v1857_v23 = vld [vmem:[%s2706_s5] ss:$8 sps:$4 sm:$0xff]   ;;  %v1859_v24 = vld [vmem:[%s2706_s5 + $0x4] ss:$8 sps:$4 sm:$0xff]   ;;  %v1862_v25 = vld [vmem:[%s2706_s5 + $0x14] ss:$8 sps:$4 sm:$0xff]  }
   0x8   :  { %1672 = vmatmul.mubr.msk.bf16.vlgmr.msra.gmra.mrb[0].mxu0 %vm190_vm2, %v1823_v7  ;;  %1680 = vmatmul.mubr.msk.bf16.vlgmr.msra.gmra.mrb[0].mxu1 %vm190_vm2, %v1841_v10  ;;  %v1833_v26 = vld [vmem:[%s2705_s0] sm:$0xff]   ;;  %v1860_v27 = vld [vmem:[%s2706_s5 + $0x10] ss:$8 sps:$4 sm:$0xff]   ;;  %v1868_v31 = vld [vmem:[%s2706_s5 + $0x34] ss:$8 sps:$4 sm:$0xff]  }
   0x9   :  { %581 = vmatpush1.bf16.msra.mxu0 %v575_v8  ;;  %288 = vmatprep.mubr.bf16.mxu0 %v1905_v1  ;;  %v1865_v28 = vld [vmem:[%s2706_s5 + $0x24] ss:$8 sps:$4 sm:$0xff]   ;;  %v1863_v30 = vld [vmem:[%s2706_s5 + $0x20] ss:$8 sps:$4 sm:$0xff]   ;;  %v1866_v33 = vld [vmem:[%s2706_s5 + $0x30] ss:$8 sps:$4 sm:$0xff]  }
   0xa   :  { %368 = vmatprep.mubr.bf16.mxu1 %v1905_v1  ;;  %1149 = vmatprep.subr.bf16.mxu1 %v1859_v24  ;;  %v1834_v32 = vld [vmem:[%s2705_s0 + $0x8] sm:$0xff]   ;;  %v1874_v36 = vld [vmem:[%s2706_s5 + $0x54] ss:$8 sps:$4 sm:$0xff]   ;;  %v1872_v38 = vld [vmem:[%s2706_s5 + $0x50] ss:$8 sps:$4 sm:$0xff]  }
   0xb   :  { %1150 = vmatpush1.bf16.msra.mxu1 %v1857_v23  ;;  %v1871_v34 = vld [vmem:[%s2706_s5 + $0x44] ss:$8 sps:$4 sm:$0xff]   ;;  %v1869_v35 = vld [vmem:[%s2706_s5 + $0x40] ss:$8 sps:$4 sm:$0xff]   ;;  %v1835_v37 = vld [vmem:[%s2705_s0 + $0x10] sm:$0xff]  }
   0xc   :  { %1151 = vmatprep.subr.bf16.mxu1 %v1862_v25  ;;  %v1877_v39 = vld [vmem:[%s2706_s5 + $0x64] ss:$8 sps:$4 sm:$0xff]   ;;  %v1875_v40 = vld [vmem:[%s2706_s5 + $0x60] ss:$8 sps:$4 sm:$0xff]   ;;  %v1880_v41 = vld [vmem:[%s2706_s5 + $0x74] ss:$8 sps:$4 sm:$0xff]  }
   0xd   :  { %v1836_v42 = vld [vmem:[%s2705_s0 + $0x18] sm:$0xff]   ;;  %v1883_v44 = vld [vmem:[%s2706_s5 + $0x84] ss:$8 sps:$4 sm:$0xff]   ;;  %v1881_v45 = vld [vmem:[%s2706_s5 + $0x80] ss:$8 sps:$4 sm:$0xff]  }
   0xe   :  { %v1878_v43 = vld [vmem:[%s2706_s5 + $0x70] ss:$8 sps:$4 sm:$0xff]   ;;  %v1886_v46 = vld [vmem:[%s2706_s5 + $0x94] ss:$8 sps:$4 sm:$0xff]   ;;  %v1837_v47 = vld [vmem:[%s2705_s0 + $0x20] sm:$0xff]  }
   0xf   :  { %1152 = vmatpush1.bf16.msra.mxu1 %v1860_v27  ;;  %v1884_v48 = vld [vmem:[%s2706_s5 + $0x90] ss:$8 sps:$4 sm:$0xff]   ;;  %v1889_v49 = vld [vmem:[%s2706_s5 + $0xa4] ss:$8 sps:$4 sm:$0xff]   ;;  %v1887_v50 = vld [vmem:[%s2706_s5 + $0xa0] ss:$8 sps:$4 sm:$0xff]  }
  0x10   :  { %1673 = vmatmul.mubr.msk.bf16.gmra.mrb[4].mxu0 %vm190_vm2, %v1826_v9  ;;  %1681 = vmatmul.mubr.msk.bf16.gmra.mrb[4].mxu1 %vm190_vm2, %v1843_v12  ;;  %v1892_v51 = vld [vmem:[%s2706_s5 + $0xb4] ss:$8 sps:$4 sm:$0xff]   ;;  %v1838_v52 = vld [vmem:[%s2705_s0 + $0x28] sm:$0xff]   ;;  %v1890_v53 = vld [vmem:[%s2706_s5 + $0xb0] ss:$8 sps:$4 sm:$0xff]  }
  0x11   :  { %298 = vmatprep.mubr.bf16.mxu0 %v1905_v1  ;;  %378 = vmatprep.mubr.bf16.mxu1 %v1905_v1  ;;  %v1895_v54 = vld [vmem:[%s2706_s5 + $0xc4] ss:$8 sps:$4 sm:$0xff]   ;;  %v1893_v55 = vld [vmem:[%s2706_s5 + $0xc0] ss:$8 sps:$4 sm:$0xff]   ;;  %v1898_v56 = vld [vmem:[%s2706_s5 + $0xd4] ss:$8 sps:$4 sm:$0xff]  }
  0x12   :  { %1153 = vmatprep.subr.bf16.mxu1 %v1865_v28  ;;  %v1839_v57 = vld [vmem:[%s2705_s0 + $0x30] sm:$0xff]   ;;  %v1840_v59 = vld [vmem:[%s2705_s0 + $0x38] sm:$0xff]   ;;  %v1842_v60 = vld [vmem:[%s2705_s0 + $0x40] sm:$0xff]   ;;  %v775_v28 = vlaneseq }
  0x13   :  { %1154 = vmatpush1.bf16.msra.mxu1 %v1863_v30  ;;  %v1896_v58 = vld [vmem:[%s2706_s5 + $0xd0] ss:$8 sps:$4 sm:$0xff]   ;;  %v1844_v61 = vld [vmem:[%s2705_s0 + $0x48] sm:$0xff]   ;;  %v1904_v3 = vld [vmem:[%s2706_s5 + $0xf4] ss:$8 sps:$4 sm:$0xff]  }
  0x14   :  { %1155 = vmatprep.subr.bf16.mxu1 %v1868_v31  ;;  %v1846_v62 = vld [vmem:[%s2705_s0 + $0x50] sm:$0xff]   ;;  %v1848_v63 = vld [vmem:[%s2705_s0 + $0x58] sm:$0xff]   ;;  %v1901_v0 = vld [vmem:[%s2706_s5 + $0xe4] ss:$8 sps:$4 sm:$0xff]   ;;  %v776_v30 = vshrl.u32 %v775_v28, 7 }
  0x15   :  { %v1899_v2 = vld [vmem:[%s2706_s5 + $0xe0] ss:$8 sps:$4 sm:$0xff]   ;;  %v1902_v4 = vld [vmem:[%s2706_s5 + $0xf0] ss:$8 sps:$4 sm:$0xff]  }
  0x16   :  { %v1850_v5 = vld [vmem:[%s2705_s0 + $0x60] sm:$0xff]   ;;  %v1852_v6 = vld [vmem:[%s2705_s0 + $0x68] sm:$0xff]   ;;  %v1854_v7 = vld [vmem:[%s2705_s0 + $0x70] sm:$0xff]  }
  0x17   :  { %1156 = vmatpush1.bf16.msra.mxu1 %v1866_v33  ;;  %v1856_v8 = vld [vmem:[%s2705_s0 + $0x78] sm:$0xff]  }
  0x18   :  { %1674 = vmatmul.mubr.msk.bf16.gmra.mrb[8].mxu0 %vm190_vm2, %v1827_v11  ;;  %1682 = vmatmul.mubr.msk.bf16.gmra.mrb[8].mxu1 %vm190_vm2, %v1845_v14 }
  0x19   :  { %308 = vmatprep.mubr.bf16.mxu0 %v1905_v1  ;;  %388 = vmatprep.mubr.bf16.mxu1 %v1905_v1 }
  0x1a   :  { %1157 = vmatprep.subr.bf16.mxu1 %v1871_v34  ;;  %v2266_v34 = vsub.s32 0, %v776_v30 }
  0x1b   :  { %1158 = vmatpush1.bf16.msra.mxu1 %v1869_v35  ;;  %v773_v35 = vld [vmem:[%s2707_s4] sm:$0x3] }
  0x1c   :  { %1159 = vmatprep.subr.bf16.mxu1 %v1874_v36  ;;  %v2271_v36 = vsub.s32 1, %v776_v30 }
  0x1f   :  { %1160 = vmatpush1.bf16.msra.mxu1 %v1872_v38  ;;  %v2276_v38 = vrot.slane %v773_v35, %v2266_v34 }
  0x20   :  { %1675 = vmatmul.mubr.msk.bf16.gmra.mrb[12].mxu0 %vm190_vm2, %v1828_v13  ;;  %1683 = vmatmul.mubr.msk.bf16.gmra.mrb[12].mxu1 %vm190_vm2, %v1847_v16 }
  0x21   :  { %318 = vmatprep.mubr.bf16.mxu0 %v1905_v1  ;;  %398 = vmatprep.mubr.bf16.mxu1 %v1905_v1 }
  0x22   :  { %1161 = vmatprep.subr.bf16.mxu1 %v1877_v39 }
  0x23   :  { %1162 = vmatpush1.bf16.msra.mxu1 %v1875_v40  ;;  %v2281_v40 = vrot.slane %v773_v35, %v2271_v36 }
  0x24   :  { %1163 = vmatprep.subr.bf16.mxu1 %v1880_v41 }
  0x27   :  { %1164 = vmatpush1.bf16.msra.mxu1 %v1878_v43 }
  0x28   :  { %1676 = vmatmul.mubr.msk.bf16.gmra.mrb[16].mxu0 %vm190_vm2, %v1829_v15  ;;  %1684 = vmatmul.mubr.msk.bf16.gmra.mrb[16].mxu1 %vm190_vm2, %v1849_v18 }
  0x29   :  { %328 = vmatprep.mubr.bf16.mxu0 %v1905_v1  ;;  %408 = vmatprep.mubr.bf16.mxu1 %v1905_v1 }
  0x2a   :  { %1165 = vmatprep.subr.bf16.mxu1 %v1883_v44 }
  0x2b   :  { %1166 = vmatpush1.bf16.msra.mxu1 %v1881_v45 }
  0x2c   :  { %1167 = vmatprep.subr.bf16.mxu1 %v1886_v46 }
  0x2f   :  { %1168 = vmatpush1.bf16.msra.mxu1 %v1884_v48 }
  0x30   :  { %1677 = vmatmul.mubr.msk.bf16.gmra.mrb[20].mxu0 %vm190_vm2, %v1830_v17  ;;  %1685 = vmatmul.mubr.msk.bf16.gmra.mrb[20].mxu1 %vm190_vm2, %v1851_v20 }
  0x31   :  { %338 = vmatprep.mubr.bf16.mxu0 %v1905_v1  ;;  %418 = vmatprep.mubr.bf16.mxu1 %v1905_v1 }
  0x32   :  { %1169 = vmatprep.subr.bf16.mxu1 %v1889_v49 }
  0x33   :  { %1170 = vmatpush1.bf16.msra.mxu1 %v1887_v50 }
  0x34   :  { %1171 = vmatprep.subr.bf16.mxu1 %v1892_v51 }
  0x37   :  { %1172 = vmatpush1.bf16.msra.mxu1 %v1890_v53 }
  0x38   :  { %1678 = vmatmul.mubr.msk.bf16.gmra.mrb[24].mxu0 %vm190_vm2, %v1831_v19  ;;  %1686 = vmatmul.mubr.msk.bf16.gmra.mrb[24].mxu1 %vm190_vm2, %v1853_v22 }
  0x39   :  { %348 = vmatprep.mubr.bf16.mxu0 %v1905_v1  ;;  %428 = vmatprep.mubr.bf16.mxu1 %v1905_v1 }
  0x3a   :  { %1173 = vmatprep.subr.bf16.mxu1 %v1895_v54 }
  0x3b   :  { %1174 = vmatpush1.bf16.msra.mxu1 %v1893_v55 }
  0x3c   :  { %1175 = vmatprep.subr.bf16.mxu1 %v1898_v56 }
  0x3f   :  { %1176 = vmatpush1.bf16.msra.mxu1 %v1896_v58 }
  0x40   :  { %1679 = vmatmul.mubr.msk.bf16.gmra.mrb[28].mxu0 %vm190_vm2, %v1832_v21  ;;  %1687 = vmatmul.mubr.msk.bf16.gmra.mrb[28].mxu1 %vm190_vm2, %v1855_v29 }
  0x41   :  { %612 = vmatprep.mubr.bf16.mxu0 %v1905_v1  ;;  %1177 = vmatprep.subr.bf16.mxu1 %v1901_v0 }
  0x43   :  { %1178 = vmatpush1.bf16.msra.mxu1 %v1899_v2 }
  0x44   :  { %1179 = vmatprep.subr.bf16.mxu1 %v1904_v3 }
  0x47   :  { %1180 = vmatpush1.bf16.msra.mxu1 %v1902_v4 }
  0x48   :  { %1707 = vmatmul.mubr.msk.bf16.vlgmr.msra.gmra.mrb[0].mxu0 %vm524_vm3, %v1833_v26 }
  0x49   :  { %622 = vmatprep.mubr.bf16.mxu0 %v1905_v1 }
  0x50   :  { %1708 = vmatmul.mubr.msk.bf16.gmra.mrb[4].mxu0 %vm524_vm3, %v1834_v32 }
  0x51   :  { %632 = vmatprep.mubr.bf16.mxu0 %v1905_v1 }
  0x58   :  { %1709 = vmatmul.mubr.msk.bf16.gmra.mrb[8].mxu0 %vm524_vm3, %v1835_v37 }
  0x59   :  { %642 = vmatprep.mubr.bf16.mxu0 %v1905_v1 }
  0x60   :  { %1710 = vmatmul.mubr.msk.bf16.gmra.mrb[12].mxu0 %vm524_vm3, %v1836_v42 }
  0x61   :  { %652 = vmatprep.mubr.bf16.mxu0 %v1905_v1 }
  0x68   :  { %1711 = vmatmul.mubr.msk.bf16.gmra.mrb[16].mxu0 %vm524_vm3, %v1837_v47 }
  0x69   :  { %662 = vmatprep.mubr.bf16.mxu0 %v1905_v1 }
  0x70   :  { %1712 = vmatmul.mubr.msk.bf16.gmra.mrb[20].mxu0 %vm524_vm3, %v1838_v52 }
  0x71   :  { %672 = vmatprep.mubr.bf16.mxu0 %v1905_v1 }
  0x78   :  { %1713 = vmatmul.mubr.msk.bf16.gmra.mrb[24].mxu0 %vm524_vm3, %v1839_v57 }
  0x79   :  { %682 = vmatprep.mubr.bf16.mxu0 %v1905_v1 }
  0x80   :  { %1714 = vmatmul.mubr.msk.bf16.gmra.mrb[28].mxu0 %vm524_vm3, %v1840_v59 }
  0x81   :  { %692 = vmatprep.mubr.bf16.mxu0 %v1905_v1 }
  0x88   :  { %1715 = vmatmul.mubr.msk.bf16.gmra.mrb[32].mxu0 %vm524_vm3, %v1842_v60 }
  0x89   :  { %702 = vmatprep.mubr.bf16.mxu0 %v1905_v1 }
  0x90   :  { %1716 = vmatmul.mubr.msk.bf16.gmra.mrb[36].mxu0 %vm524_vm3, %v1844_v61 }
  0x91   :  { %712 = vmatprep.mubr.bf16.mxu0 %v1905_v1 }
  0x98   :  { %1717 = vmatmul.mubr.msk.bf16.gmra.mrb[40].mxu0 %vm524_vm3, %v1846_v62 }
  0x99   :  { %722 = vmatprep.mubr.bf16.mxu0 %v1905_v1 }
  0xa0   :  { %1718 = vmatmul.mubr.msk.bf16.gmra.mrb[44].mxu0 %vm524_vm3, %v1848_v63 }
  0xa1   :  { %732 = vmatprep.mubr.bf16.mxu0 %v1905_v1 }
  0xa8   :  { %1719 = vmatmul.mubr.msk.bf16.gmra.mrb[48].mxu0 %vm524_vm3, %v1850_v5 }
  0xa9   :  { %742 = vmatprep.mubr.bf16.mxu0 %v1905_v1 }
  0xb0   :  { %1720 = vmatmul.mubr.msk.bf16.gmra.mrb[52].mxu0 %vm524_vm3, %v1852_v6 }
  0xb1   :  { %752 = vmatprep.mubr.bf16.mxu0 %v1905_v1 }
  0xb8   :  { %1721 = vmatmul.mubr.msk.bf16.gmra.mrb[56].mxu0 %vm524_vm3, %v1854_v7 }
  0xb9   :  { %762 = vmatprep.mubr.bf16.mxu0 %v1905_v1 }
  0xc0   :  { %1722 = vmatmul.mubr.msk.bf16.gmra.mrb[60].mxu0 %vm524_vm3, %v1856_v8 }
  0xdb   :  { %v2218_v9 = vpop.f32.mrb[0].mxu1 }
  0xdc   :  { %v2220_v10 = vpop.f32.mrb[1].mxu1 }
  0xdd   :  { %v2222_v11 = vpop.f32.mrb[2].mxu1 }
  0xde   :  { %v2224_v12 = vpop.f32.mrb[3].mxu1 }
  0xe3   :  { %v2226_v13 = vpop.f32.mrb[4].mxu1 }
  0xe4   :  { %v2228_v14 = vpop.f32.mrb[5].mxu1 }
  0xe5   :  { %v2230_v15 = vpop.f32.mrb[6].mxu1 }
  0xe6   :  { %v2232_v1 = vpop.f32.mrb[7].mxu1 }
  0xeb   :  { %v2234_v16 = vpop.f32.mrb[8].mxu1 }
  0xec   :  { %v2236_v17 = vpop.f32.mrb[9].mxu1 }
  0xed   :  { %v2238_v18 = vpop.f32.mrb[10].mxu1 }
  0xee   :  { %v2240_v19 = vpop.f32.mrb[11].mxu1 }
  0xf3   :  { %v2242_v20 = vpop.f32.mrb[12].mxu1 }
  0xf4   :  { %v2244_v21 = vpop.f32.mrb[13].mxu1 }
  0xf5   :  { %v2246_v22 = vpop.f32.mrb[14].mxu1 }
  0xf6   :  { %v2248_v23 = vpop.f32.mrb[15].mxu1 }
  0xfb   :  { %v2250_v24 = vpop.f32.mrb[16].mxu1 }
  0xfc   :  { %v2252_v25 = vpop.f32.mrb[17].mxu1 }
  0xfd   :  { %v2254_v26 = vpop.f32.mrb[18].mxu1 }
  0xfe   :  { %v2256_v27 = vpop.f32.mrb[19].mxu1 }
 0x103   :  { %v2258_v29 = vpop.f32.mrb[20].mxu1 }
 0x104   :  { %v2260_v31 = vpop.f32.mrb[21].mxu1 }
 0x105   :  { %v2262_v32 = vpop.f32.mrb[22].mxu1 }
 0x106   :  { %v2264_v33 = vpop.f32.mrb[23].mxu1 }
 0x10b   :  { %v2273_v37 = vpop.f32.mrb[24].mxu1 }
 0x10c   :  { %v2278_v39 = vpop.f32.mrb[25].mxu1 }
 0x10d   :  { %v2283_v41 = vpop.f32.mrb[26].mxu1 }
 0x10e   :  { %v2285_v42 = vpop.f32.mrb[27].mxu1 }
 0x113   :  { %v2291_v51 = vpop.f32.mrb[28].mxu1 }
 0x114   :  { %v2293_v54 = vpop.f32.mrb[29].mxu1 }
 0x115   :  { %v2295_v57 = vpop.f32.mrb[30].mxu1 }
 0x116   :  { %v2297_v59 = vpop.f32.mrb[31].mxu1 }
 0x11b   :  { %v614_v43 = vpop.f32.mrb[0].mxu0 }
 0x11c   :  { %v785_v44 = vadd.f32 %v2276_v38, %v614_v43  ;;  %v616_v45 = vpop.f32.mrb[1].mxu0 }
 0x11d   :  { %v786_v46 = vadd.f32 %v2281_v40, %v616_v45  ;;  %v618_v47 = vpop.f32.mrb[2].mxu0 }
 0x11e   :  { %v787_v48 = vadd.f32 %v2276_v38, %v618_v47  ;;  %v620_v49 = vpop.f32.mrb[3].mxu0  ;;  %v849_v52 = vmax.f32 %v785_v44, 0.0 }
 0x11f   :  { %v788_v50 = vadd.f32 %v2281_v40, %v620_v49  ;;  %v850_v55 = vmax.f32 %v786_v46, 0.0 }
 0x120   :  { %v851_v53 = vmax.f32 %v787_v48, 0.0 }
 0x121   :  { %v852_v56 = vmax.f32 %v788_v50, 0.0 }
 0x122   :  { %v913_v58 = vpack.c.bf16 %v851_v53, %v849_v52 }
 0x123   :  { %v914_v60 = vpack.c.bf16 %v852_v56, %v850_v55  ;;  %v624_v61 = vpop.f32.mrb[4].mxu0 }
 0x124   :  { %v789_v62 = vadd.f32 %v2276_v38, %v624_v61  ;;  %v626_v63 = vpop.f32.mrb[5].mxu0 }
 0x125   :  { %v790_v0 = vadd.f32 %v2281_v40, %v626_v63  ;;  %v628_v2 = vpop.f32.mrb[6].mxu0  ;;  %1181 = vmatprep.mubr.bf16.mxu1 %v914_v60 }
 0x126   :  { %v791_v3 = vadd.f32 %v2276_v38, %v628_v2  ;;  %v630_v4 = vpop.f32.mrb[7].mxu0  ;;  %1182 = vmatmul.mubr.bf16.vlgmr.msra.gmra.mrb[32].mxu1 %v913_v58  ;;  %v853_v6 = vmax.f32 %v789_v62, 0.0 }
 0x127   :  { %v792_v5 = vadd.f32 %v2281_v40, %v630_v4  ;;  %v854_v8 = vmax.f32 %v790_v0, 0.0 }
 0x128   :  { %v855_v7 = vmax.f32 %v791_v3, 0.0 }
 0x129   :  { %v856_v28 = vmax.f32 %v792_v5, 0.0 }
 0x12a   :  { %v915_v30 = vpack.c.bf16 %v855_v7, %v853_v6 }
 0x12b   :  { %v916_v35 = vpack.c.bf16 %v856_v28, %v854_v8  ;;  %v634_v43 = vpop.f32.mrb[8].mxu0 }
 0x12c   :  { %v793_v44 = vadd.f32 %v2276_v38, %v634_v43  ;;  %v636_v45 = vpop.f32.mrb[9].mxu0 }
 0x12d   :  { %v794_v46 = vadd.f32 %v2281_v40, %v636_v45  ;;  %v638_v47 = vpop.f32.mrb[10].mxu0  ;;  %1191 = vmatprep.mubr.bf16.mxu1 %v916_v35 }
 0x12e   :  { %v795_v48 = vadd.f32 %v2276_v38, %v638_v47  ;;  %v640_v49 = vpop.f32.mrb[11].mxu0  ;;  %1192 = vmatmul.mubr.bf16.gmra.mrb[36].mxu1 %v915_v30  ;;  %v857_v52 = vmax.f32 %v793_v44, 0.0 }
 0x12f   :  { %v796_v50 = vadd.f32 %v2281_v40, %v640_v49  ;;  %v858_v55 = vmax.f32 %v794_v46, 0.0 }
 0x130   :  { %v859_v53 = vmax.f32 %v795_v48, 0.0 }
 0x131   :  { %v860_v56 = vmax.f32 %v796_v50, 0.0 }
 0x132   :  { %v917_v58 = vpack.c.bf16 %v859_v53, %v857_v52 }
 0x133   :  { %v918_v60 = vpack.c.bf16 %v860_v56, %v858_v55  ;;  %v644_v61 = vpop.f32.mrb[12].mxu0 }
 0x134   :  { %v797_v62 = vadd.f32 %v2276_v38, %v644_v61  ;;  %v646_v63 = vpop.f32.mrb[13].mxu0 }
 0x135   :  { %v798_v0 = vadd.f32 %v2281_v40, %v646_v63  ;;  %v648_v2 = vpop.f32.mrb[14].mxu0  ;;  %1201 = vmatprep.mubr.bf16.mxu1 %v918_v60 }
 0x136   :  { %v799_v3 = vadd.f32 %v2276_v38, %v648_v2  ;;  %v650_v4 = vpop.f32.mrb[15].mxu0  ;;  %1202 = vmatmul.mubr.bf16.gmra.mrb[40].mxu1 %v917_v58  ;;  %v861_v6 = vmax.f32 %v797_v62, 0.0 }
 0x137   :  { %v800_v5 = vadd.f32 %v2281_v40, %v650_v4  ;;  %v862_v8 = vmax.f32 %v798_v0, 0.0 }
 0x138   :  { %v863_v7 = vmax.f32 %v799_v3, 0.0 }
 0x139   :  { %v864_v28 = vmax.f32 %v800_v5, 0.0 }
 0x13a   :  { %v919_v30 = vpack.c.bf16 %v863_v7, %v861_v6 }
 0x13b   :  { %v920_v35 = vpack.c.bf16 %v864_v28, %v862_v8  ;;  %v654_v43 = vpop.f32.mrb[16].mxu0 }
 0x13c   :  { %v801_v44 = vadd.f32 %v2276_v38, %v654_v43  ;;  %v656_v45 = vpop.f32.mrb[17].mxu0 }
 0x13d   :  { %v802_v46 = vadd.f32 %v2281_v40, %v656_v45  ;;  %v658_v47 = vpop.f32.mrb[18].mxu0  ;;  %1211 = vmatprep.mubr.bf16.mxu1 %v920_v35 }
 0x13e   :  { %v803_v48 = vadd.f32 %v2276_v38, %v658_v47  ;;  %v660_v49 = vpop.f32.mrb[19].mxu0  ;;  %1212 = vmatmul.mubr.bf16.gmra.mrb[44].mxu1 %v919_v30  ;;  %v865_v52 = vmax.f32 %v801_v44, 0.0 }
 0x13f   :  { %v804_v50 = vadd.f32 %v2281_v40, %v660_v49  ;;  %v866_v55 = vmax.f32 %v802_v46, 0.0 }
 0x140   :  { %v867_v53 = vmax.f32 %v803_v48, 0.0 }
 0x141   :  { %v868_v56 = vmax.f32 %v804_v50, 0.0 }
 0x142   :  { %v921_v58 = vpack.c.bf16 %v867_v53, %v865_v52 }
 0x143   :  { %v922_v60 = vpack.c.bf16 %v868_v56, %v866_v55  ;;  %v664_v61 = vpop.f32.mrb[20].mxu0 }
 0x144   :  { %v805_v62 = vadd.f32 %v2276_v38, %v664_v61  ;;  %v666_v63 = vpop.f32.mrb[21].mxu0 }
 0x145   :  { %v806_v0 = vadd.f32 %v2281_v40, %v666_v63  ;;  %v668_v2 = vpop.f32.mrb[22].mxu0  ;;  %1221 = vmatprep.mubr.bf16.mxu1 %v922_v60 }
 0x146   :  { %v807_v3 = vadd.f32 %v2276_v38, %v668_v2  ;;  %v670_v4 = vpop.f32.mrb[23].mxu0  ;;  %1222 = vmatmul.mubr.bf16.gmra.mrb[48].mxu1 %v921_v58  ;;  %v869_v6 = vmax.f32 %v805_v62, 0.0 }
 0x147   :  { %v808_v5 = vadd.f32 %v2281_v40, %v670_v4  ;;  %v870_v8 = vmax.f32 %v806_v0, 0.0 }
 0x148   :  { %v871_v7 = vmax.f32 %v807_v3, 0.0 }
 0x149   :  { %v872_v28 = vmax.f32 %v808_v5, 0.0 }
 0x14a   :  { %v923_v30 = vpack.c.bf16 %v871_v7, %v869_v6 }
 0x14b   :  { %v924_v35 = vpack.c.bf16 %v872_v28, %v870_v8  ;;  %v674_v43 = vpop.f32.mrb[24].mxu0 }
 0x14c   :  { %v809_v44 = vadd.f32 %v2276_v38, %v674_v43  ;;  %v676_v45 = vpop.f32.mrb[25].mxu0 }
 0x14d   :  { %v810_v46 = vadd.f32 %v2281_v40, %v676_v45  ;;  %v678_v47 = vpop.f32.mrb[26].mxu0  ;;  %1231 = vmatprep.mubr.bf16.mxu1 %v924_v35 }
 0x14e   :  { %v811_v48 = vadd.f32 %v2276_v38, %v678_v47  ;;  %v680_v49 = vpop.f32.mrb[27].mxu0  ;;  %1232 = vmatmul.mubr.bf16.gmra.mrb[52].mxu1 %v923_v30  ;;  %v873_v52 = vmax.f32 %v809_v44, 0.0 }
 0x14f   :  { %v812_v50 = vadd.f32 %v2281_v40, %v680_v49  ;;  %v874_v55 = vmax.f32 %v810_v46, 0.0 }
 0x150   :  { %v875_v53 = vmax.f32 %v811_v48, 0.0 }
 0x151   :  { %v876_v56 = vmax.f32 %v812_v50, 0.0 }
 0x152   :  { %v925_v58 = vpack.c.bf16 %v875_v53, %v873_v52 }
 0x153   :  { %v926_v60 = vpack.c.bf16 %v876_v56, %v874_v55  ;;  %v684_v61 = vpop.f32.mrb[28].mxu0 }
 0x154   :  { %v813_v62 = vadd.f32 %v2276_v38, %v684_v61  ;;  %v686_v63 = vpop.f32.mrb[29].mxu0 }
 0x155   :  { %v814_v0 = vadd.f32 %v2281_v40, %v686_v63  ;;  %v688_v2 = vpop.f32.mrb[30].mxu0  ;;  %1241 = vmatprep.mubr.bf16.mxu1 %v926_v60 }
 0x156   :  { %v815_v3 = vadd.f32 %v2276_v38, %v688_v2  ;;  %v690_v4 = vpop.f32.mrb[31].mxu0  ;;  %1242 = vmatmul.mubr.bf16.gmra.mrb[56].mxu1 %v925_v58  ;;  %v877_v6 = vmax.f32 %v813_v62, 0.0 }
 0x157   :  { %v816_v5 = vadd.f32 %v2281_v40, %v690_v4  ;;  %v878_v8 = vmax.f32 %v814_v0, 0.0 }
 0x158   :  { %v879_v7 = vmax.f32 %v815_v3, 0.0 }
 0x159   :  { %v880_v28 = vmax.f32 %v816_v5, 0.0 }
 0x15a   :  { %v927_v30 = vpack.c.bf16 %v879_v7, %v877_v6 }
 0x15b   :  { %v928_v35 = vpack.c.bf16 %v880_v28, %v878_v8  ;;  %v694_v43 = vpop.f32.mrb[32].mxu0 }
 0x15c   :  { %v695_v44 = vadd.f32 %v694_v43, %v2218_v9  ;;  %v696_v45 = vpop.f32.mrb[33].mxu0 }
 0x15d   :  { %v697_v46 = vadd.f32 %v696_v45, %v2220_v10  ;;  %v698_v47 = vpop.f32.mrb[34].mxu0  ;;  %1251 = vmatprep.mubr.bf16.mxu1 %v928_v35 }
 0x15e   :  { %v817_v48 = vadd.f32 %v2276_v38, %v695_v44  ;;  %v699_v49 = vadd.f32 %v698_v47, %v2222_v11  ;;  %v700_v50 = vpop.f32.mrb[35].mxu0  ;;  %1252 = vmatmul.mubr.bf16.gmra.mrb[60].mxu1 %v927_v30 }
 0x15f   :  { %v818_v52 = vadd.f32 %v2281_v40, %v697_v46  ;;  %v701_v53 = vadd.f32 %v700_v50, %v2224_v12 }
 0x160   :  { %v819_v55 = vadd.f32 %v2276_v38, %v699_v49  ;;  %v881_v9 = vmax.f32 %v817_v48, 0.0 }
 0x161   :  { %v820_v56 = vadd.f32 %v2281_v40, %v701_v53  ;;  %v882_v60 = vmax.f32 %v818_v52, 0.0 }
 0x162   :  { %v883_v58 = vmax.f32 %v819_v55, 0.0 }
 0x163   :  { %v884_v10 = vmax.f32 %v820_v56, 0.0  ;;  %v704_v61 = vpop.f32.mrb[36].mxu0 }
 0x164   :  { %v705_v62 = vadd.f32 %v704_v61, %v2226_v13  ;;  %v706_v63 = vpop.f32.mrb[37].mxu0  ;;  %v929_v0 = vpack.c.bf16 %v883_v58, %v881_v9 }
 0x165   :  { %v707_v11 = vadd.f32 %v706_v63, %v2228_v14  ;;  %v708_v2 = vpop.f32.mrb[38].mxu0  ;;  %v930_v3 = vpack.c.bf16 %v884_v10, %v882_v60 }
 0x166   :  { %v821_v4 = vadd.f32 %v2276_v38, %v705_v62  ;;  %v709_v12 = vadd.f32 %v708_v2, %v2230_v15  ;;  %v710_v5 = vpop.f32.mrb[39].mxu0 }
 0x167   :  { %v822_v6 = vadd.f32 %v2281_v40, %v707_v11  ;;  %v711_v7 = vadd.f32 %v710_v5, %v2232_v1  ;;  %1261 = vmatprep.mubr.bf16.mxu1 %v930_v3 }
 0x168   :  { %v823_v8 = vadd.f32 %v2276_v38, %v709_v12  ;;  %1262 = vmatmul.mubr.bf16.gmra.mrb[64].mxu1 %v929_v0  ;;  %v885_v28 = vmax.f32 %v821_v4, 0.0 }
 0x169   :  { %v824_v13 = vadd.f32 %v2281_v40, %v711_v7  ;;  %v886_v14 = vmax.f32 %v822_v6, 0.0 }
 0x16a   :  { %v887_v30 = vmax.f32 %v823_v8, 0.0 }
 0x16b   :  { %v888_v35 = vmax.f32 %v824_v13, 0.0  ;;  %v714_v43 = vpop.f32.mrb[40].mxu0 }
 0x16c   :  { %v715_v44 = vadd.f32 %v714_v43, %v2234_v16  ;;  %v716_v45 = vpop.f32.mrb[41].mxu0  ;;  %v931_v15 = vpack.c.bf16 %v887_v30, %v885_v28 }
 0x16d   :  { %v717_v46 = vadd.f32 %v716_v45, %v2236_v17  ;;  %v718_v47 = vpop.f32.mrb[42].mxu0  ;;  %v932_v48 = vpack.c.bf16 %v888_v35, %v886_v14 }
 0x16e   :  { %v825_v1 = vadd.f32 %v2276_v38, %v715_v44  ;;  %v719_v49 = vadd.f32 %v718_v47, %v2238_v18  ;;  %v720_v50 = vpop.f32.mrb[43].mxu0 }
 0x16f   :  { %v826_v52 = vadd.f32 %v2281_v40, %v717_v46  ;;  %v721_v53 = vadd.f32 %v720_v50, %v2240_v19  ;;  %1271 = vmatprep.mubr.bf16.mxu1 %v932_v48 }
 0x170   :  { %v827_v55 = vadd.f32 %v2276_v38, %v719_v49  ;;  %1272 = vmatmul.mubr.bf16.gmra.mrb[68].mxu1 %v931_v15  ;;  %v889_v56 = vmax.f32 %v825_v1, 0.0 }
 0x171   :  { %v828_v16 = vadd.f32 %v2281_v40, %v721_v53  ;;  %v890_v17 = vmax.f32 %v826_v52, 0.0 }
 0x172   :  { %v891_v9 = vmax.f32 %v827_v55, 0.0 }
 0x173   :  { %v892_v58 = vmax.f32 %v828_v16, 0.0  ;;  %v724_v60 = vpop.f32.mrb[44].mxu0 }
 0x174   :  { %v725_v10 = vadd.f32 %v724_v60, %v2242_v20  ;;  %v726_v61 = vpop.f32.mrb[45].mxu0  ;;  %v933_v18 = vpack.c.bf16 %v891_v9, %v889_v56 }
 0x175   :  { %v727_v62 = vadd.f32 %v726_v61, %v2244_v21  ;;  %v728_v63 = vpop.f32.mrb[46].mxu0  ;;  %v934_v0 = vpack.c.bf16 %v892_v58, %v890_v17 }
 0x176   :  { %v829_v19 = vadd.f32 %v2276_v38, %v725_v10  ;;  %v729_v11 = vadd.f32 %v728_v63, %v2246_v22  ;;  %v730_v2 = vpop.f32.mrb[47].mxu0 }
 0x177   :  { %v830_v3 = vadd.f32 %v2281_v40, %v727_v62  ;;  %v731_v4 = vadd.f32 %v730_v2, %v2248_v23  ;;  %1281 = vmatprep.mubr.bf16.mxu1 %v934_v0 }
 0x178   :  { %v831_v12 = vadd.f32 %v2276_v38, %v729_v11  ;;  %1282 = vmatmul.mubr.bf16.gmra.mrb[72].mxu1 %v933_v18  ;;  %v893_v5 = vmax.f32 %v829_v19, 0.0 }
 0x179   :  { %v832_v20 = vadd.f32 %v2281_v40, %v731_v4  ;;  %v894_v21 = vmax.f32 %v830_v3, 0.0 }
 0x17a   :  { %v895_v6 = vmax.f32 %v831_v12, 0.0 }
 0x17b   :  { %v896_v7 = vmax.f32 %v832_v20, 0.0  ;;  %v734_v8 = vpop.f32.mrb[48].mxu0 }
 0x17c   :  { %v735_v13 = vadd.f32 %v734_v8, %v2250_v24  ;;  %v736_v28 = vpop.f32.mrb[49].mxu0  ;;  %v935_v22 = vpack.c.bf16 %v895_v6, %v893_v5 }
 0x17d   :  { %v737_v30 = vadd.f32 %v736_v28, %v2252_v25  ;;  %v738_v14 = vpop.f32.mrb[50].mxu0  ;;  %v936_v35 = vpack.c.bf16 %v896_v7, %v894_v21 }
 0x17e   :  { %v833_v23 = vadd.f32 %v2276_v38, %v735_v13  ;;  %v739_v43 = vadd.f32 %v738_v14, %v2254_v26  ;;  %v740_v44 = vpop.f32.mrb[51].mxu0 }
 0x17f   :  { %v834_v45 = vadd.f32 %v2281_v40, %v737_v30  ;;  %v741_v15 = vadd.f32 %v740_v44, %v2256_v27  ;;  %1291 = vmatprep.mubr.bf16.mxu1 %v936_v35 }
 0x180   :  { %v835_v46 = vadd.f32 %v2276_v38, %v739_v43  ;;  %1292 = vmatmul.mubr.bf16.gmra.mrb[76].mxu1 %v935_v22  ;;  %v897_v47 = vmax.f32 %v833_v23, 0.0 }
 0x181   :  { %v836_v24 = vadd.f32 %v2281_v40, %v741_v15  ;;  %v898_v25 = vmax.f32 %v834_v45, 0.0 }
 0x182   :  { %v899_v48 = vmax.f32 %v835_v46, 0.0 }
 0x183   :  { %v900_v1 = vmax.f32 %v836_v24, 0.0  ;;  %v744_v49 = vpop.f32.mrb[52].mxu0 }
 0x184   :  { %v745_v50 = vadd.f32 %v744_v49, %v2258_v29  ;;  %v746_v52 = vpop.f32.mrb[53].mxu0  ;;  %v937_v26 = vpack.c.bf16 %v899_v48, %v897_v47 }
 0x185   :  { %v747_v53 = vadd.f32 %v746_v52, %v2260_v31  ;;  %v748_v55 = vpop.f32.mrb[54].mxu0  ;;  %v938_v16 = vpack.c.bf16 %v900_v1, %v898_v25 }
 0x186   :  { %v837_v27 = vadd.f32 %v2276_v38, %v745_v50  ;;  %v749_v56 = vadd.f32 %v748_v55, %v2262_v32  ;;  %v750_v9 = vpop.f32.mrb[55].mxu0 }
 0x187   :  { %v838_v17 = vadd.f32 %v2281_v40, %v747_v53  ;;  %v751_v58 = vadd.f32 %v750_v9, %v2264_v33  ;;  %1301 = vmatprep.mubr.bf16.mxu1 %v938_v16 }
 0x188   :  { %v839_v60 = vadd.f32 %v2276_v38, %v749_v56  ;;  %1302 = vmatmul.mubr.bf16.gmra.mrb[80].mxu1 %v937_v26  ;;  %v901_v10 = vmax.f32 %v837_v27, 0.0 }
 0x189   :  { %v840_v29 = vadd.f32 %v2281_v40, %v751_v58  ;;  %v902_v31 = vmax.f32 %v838_v17, 0.0 }
 0x18a   :  { %v903_v61 = vmax.f32 %v839_v60, 0.0 }
 0x18b   :  { %v904_v18 = vmax.f32 %v840_v29, 0.0  ;;  %v754_v62 = vpop.f32.mrb[56].mxu0 }
 0x18c   :  { %v755_v63 = vadd.f32 %v754_v62, %v2273_v37  ;;  %v756_v0 = vpop.f32.mrb[57].mxu0  ;;  %v939_v32 = vpack.c.bf16 %v903_v61, %v901_v10 }
 0x18d   :  { %v757_v19 = vadd.f32 %v756_v0, %v2278_v39  ;;  %v758_v11 = vpop.f32.mrb[58].mxu0  ;;  %v940_v2 = vpack.c.bf16 %v904_v18, %v902_v31 }
 0x18e   :  { %v841_v33 = vadd.f32 %v2276_v38, %v755_v63  ;;  %v759_v3 = vadd.f32 %v758_v11, %v2283_v41  ;;  %v760_v4 = vpop.f32.mrb[59].mxu0 }
 0x18f   :  { %v842_v12 = vadd.f32 %v2281_v40, %v757_v19  ;;  %v761_v20 = vadd.f32 %v760_v4, %v2285_v42  ;;  %1311 = vmatprep.mubr.bf16.mxu1 %v940_v2 }
 0x190   :  { %v843_v5 = vadd.f32 %v2276_v38, %v759_v3  ;;  %1312 = vmatmul.mubr.bf16.gmra.mrb[84].mxu1 %v939_v32  ;;  %v905_v6 = vmax.f32 %v841_v33, 0.0 }
 0x191   :  { %v844_v37 = vadd.f32 %v2281_v40, %v761_v20  ;;  %v906_v39 = vmax.f32 %v842_v12, 0.0 }
 0x192   :  { %v907_v21 = vmax.f32 %v843_v5, 0.0 }
 0x193   :  { %v908_v7 = vmax.f32 %v844_v37, 0.0  ;;  %v764_v8 = vpop.f32.mrb[60].mxu0 }
 0x194   :  { %v765_v13 = vadd.f32 %v764_v8, %v2291_v51  ;;  %v766_v28 = vpop.f32.mrb[61].mxu0  ;;  %v941_v41 = vpack.c.bf16 %v907_v21, %v905_v6 }
 0x195   :  { %v767_v22 = vadd.f32 %v766_v28, %v2293_v54  ;;  %v768_v30 = vpop.f32.mrb[62].mxu0  ;;  %v942_v14 = vpack.c.bf16 %v908_v7, %v906_v39 }
 0x196   :  { %v845_v42 = vadd.f32 %v2276_v38, %v765_v13  ;;  %v769_v35 = vadd.f32 %v768_v30, %v2295_v57  ;;  %v770_v23 = vpop.f32.mrb[63].mxu0  ;;  %v977_v57 = vld [vmem:[%s2708_s6] sm:$0x3] }
 0x197   :  { %v846_v43 = vadd.f32 %v2281_v40, %v767_v22  ;;  %v771_v44 = vadd.f32 %v770_v23, %v2297_v59  ;;  %1321 = vmatprep.mubr.bf16.mxu1 %v942_v14  ;;  %v2395_v59 = vrot.slane %v977_v57, %v2266_v34 }
 0x198   :  { %v847_v45 = vadd.f32 %v2276_v38, %v769_v35  ;;  %1322 = vmatmul.mubr.bf16.gmra.mrb[88].mxu1 %v941_v41  ;;  %v909_v15 = vmax.f32 %v845_v42, 0.0  ;;  %v2398_v38 = vrot.slane %v977_v57, %v2271_v36 }
 0x199   :  { %v848_v51 = vadd.f32 %v2281_v40, %v771_v44  ;;  %v910_v54 = vmax.f32 %v846_v43, 0.0  ;;  %v1406_v40 = vld [vmem:[%s2709_s7] sm:$0x3] }
 0x19a   :  { %v911_v46 = vmax.f32 %v847_v45, 0.0  ;;  %v2405_v50 = vrot.slane %v1406_v40, %v2266_v34  ;;  %v2409_v53 = vrot.slane %v1406_v40, %v2271_v36  ;;  %v14_v36 = vstv %s2710_s8 }
 0x19b   :  { %v912_v24 = vmax.f32 %v848_v51, 0.0  ;;  %15 = vst [vmem:[#allocation2] sm:$0x1] %v14_v36 }
 0x19c   :  { %v943_v47 = vpack.c.bf16 %v911_v46, %v909_v15 }
 0x19d   :  { %v944_v48 = vpack.c.bf16 %v912_v24, %v910_v54 }
 0x19f   :  { %1331 = vmatprep.mubr.bf16.mxu1 %v944_v48 }
 0x1a0   :  { %1332 = vmatmul.mubr.bf16.gmra.mrb[92].mxu1 %v943_v47 }
 0x1f9   :  { %v1183_v25 = vpop.f32.mrb[32].mxu1 }
 0x1fa   :  { %v1184_v1 = vadd.f32 %v1183_v25, %v2395_v59  ;;  %v1185_v49 = vpop.f32.mrb[33].mxu1 }
 0x1fb   :  { %v1186_v52 = vadd.f32 %v1185_v49, %v2398_v38  ;;  %v1187_v26 = vpop.f32.mrb[34].mxu1 }
 0x1fc   :  { %v1342_v55 = vmax.f32 %v1184_v1, 0.0  ;;  %v1188_v16 = vadd.f32 %v1187_v26, %v2395_v59  ;;  %v1189_v27 = vpop.f32.mrb[35].mxu1 }
 0x1fd   :  { %v1343_v56 = vmax.f32 %v1186_v52, 0.0  ;;  %v1190_v9 = vadd.f32 %v1189_v27, %v2398_v38 }
 0x1fe   :  { %v1344_v17 = vmax.f32 %v1188_v16, 0.0  ;;  %v1418_v58 = vmul.f32 %v2405_v50, %v1342_v55 }
 0x1ff   :  { %v1345_v60 = vmax.f32 %v1190_v9, 0.0  ;;  %v1419_v34 = vmul.f32 %v2409_v53, %v1343_v56 }
 0x200   :  { %v1420_v29 = vmul.f32 %v2405_v50, %v1344_v17 }
 0x201   :  { %v1421_v10 = vmul.f32 %v2409_v53, %v1345_v60  ;;  %v1193_v61 = vpop.f32.mrb[36].mxu1  ;;  %v1482_v31 = vadd.f32 %v1419_v34, %v1418_v58 }
 0x202   :  { %v1194_v18 = vadd.f32 %v1193_v61, %v2395_v59  ;;  %v1195_v62 = vpop.f32.mrb[37].mxu1 }
 0x203   :  { %v1196_v63 = vadd.f32 %v1195_v62, %v2398_v38  ;;  %1483 = vadd.xlane.f32.xlu0 %v1482_v31  ;;  %v1197_v0 = vpop.f32.mrb[38].mxu1  ;;  %v1485_v32 = vadd.f32 %v1421_v10, %v1420_v29 }
 0x204   :  { %v1346_v19 = vmax.f32 %v1194_v18, 0.0  ;;  %v1198_v11 = vadd.f32 %v1197_v0, %v2395_v59  ;;  %v1199_v2 = vpop.f32.mrb[39].mxu1 }
 0x205   :  { %v1347_v33 = vmax.f32 %v1196_v63, 0.0  ;;  %v1200_v3 = vadd.f32 %v1199_v2, %v2398_v38 }
 0x206   :  { %v1348_v4 = vmax.f32 %v1198_v11, 0.0  ;;  %v1422_v12 = vmul.f32 %v2405_v50, %v1346_v19 }
 0x207   :  { %v1349_v20 = vmax.f32 %v1200_v3, 0.0  ;;  %1486 = vadd.xlane.f32.xlu0 %v1485_v32  ;;  %v1423_v5 = vmul.f32 %v2409_v53, %v1347_v33 }
 0x208   :  { %v1424_v37 = vmul.f32 %v2405_v50, %v1348_v4 }
 0x209   :  { %v1425_v6 = vmul.f32 %v2409_v53, %v1349_v20  ;;  %v1203_v21 = vpop.f32.mrb[40].mxu1  ;;  %v1488_v39 = vadd.f32 %v1423_v5, %v1422_v12 }
 0x20a   :  { %v1204_v7 = vadd.f32 %v1203_v21, %v2395_v59  ;;  %v1205_v8 = vpop.f32.mrb[41].mxu1 }
 0x20b   :  { %v1206_v13 = vadd.f32 %v1205_v8, %v2398_v38  ;;  %1489 = vadd.xlane.f32.xlu1 %v1488_v39  ;;  %v1207_v28 = vpop.f32.mrb[42].mxu1  ;;  %v1491_v41 = vadd.f32 %v1425_v6, %v1424_v37 }
 0x20c   :  { %v1350_v22 = vmax.f32 %v1204_v7, 0.0  ;;  %v1208_v30 = vadd.f32 %v1207_v28, %v2395_v59  ;;  %v1209_v14 = vpop.f32.mrb[43].mxu1 }
 0x20d   :  { %v1351_v42 = vmax.f32 %v1206_v13, 0.0  ;;  %v1210_v35 = vadd.f32 %v1209_v14, %v2398_v38 }
 0x20e   :  { %v1426_v23 = vmul.f32 %v2405_v50, %v1350_v22  ;;  %v1352_v43 = vmax.f32 %v1208_v30, 0.0 }
 0x20f   :  { %v1427_v44 = vmul.f32 %v2409_v53, %v1351_v42  ;;  %v1353_v45 = vmax.f32 %v1210_v35, 0.0  ;;  %1492 = vadd.xlane.f32.xlu1 %v1491_v41 }
 0x210   :  { %v1428_v51 = vmul.f32 %v2405_v50, %v1352_v43 }
 0x211   :  { %v1429_v15 = vmul.f32 %v2409_v53, %v1353_v45  ;;  %v1213_v46 = vpop.f32.mrb[44].mxu1  ;;  %v1494_v54 = vadd.f32 %v1427_v44, %v1426_v23 }
 0x212   :  { %v1214_v24 = vadd.f32 %v1213_v46, %v2395_v59  ;;  %v1215_v47 = vpop.f32.mrb[45].mxu1 }
 0x213   :  { %v1216_v48 = vadd.f32 %v1215_v47, %v2398_v38  ;;  %1495 = vadd.xlane.f32.xlu0 %v1494_v54  ;;  %v1217_v57 = vpop.f32.mrb[46].mxu1  ;;  %v1497_v40 = vadd.f32 %v1429_v15, %v1428_v51 }
 0x214   :  { %v1354_v25 = vmax.f32 %v1214_v24, 0.0  ;;  %v1218_v1 = vadd.f32 %v1217_v57, %v2395_v59  ;;  %v1219_v49 = vpop.f32.mrb[47].mxu1 }
 0x215   :  { %v1355_v52 = vmax.f32 %v1216_v48, 0.0  ;;  %v1220_v26 = vadd.f32 %v1219_v49, %v2398_v38  ;;  %1498 = vadd.xlane.f32.xlu1 %v1497_v40 }
 0x216   :  { %v1430_v55 = vmul.f32 %v2405_v50, %v1354_v25  ;;  %v1356_v16 = vmax.f32 %v1218_v1, 0.0 }
 0x217   :  { %v1431_v27 = vmul.f32 %v2409_v53, %v1355_v52  ;;  %v1357_v56 = vmax.f32 %v1220_v26, 0.0 }
 0x218   :  { %v1432_v9 = vmul.f32 %v2405_v50, %v1356_v16 }
 0x219   :  { %v1433_v17 = vmul.f32 %v2409_v53, %v1357_v56  ;;  %v1223_v58 = vpop.f32.mrb[48].mxu1  ;;  %v1500_v60 = vadd.f32 %v1431_v27, %v1430_v55 }
 0x21a   :  { %v1224_v34 = vadd.f32 %v1223_v58, %v2395_v59  ;;  %v1225_v29 = vpop.f32.mrb[49].mxu1 }
 0x21b   :  { %v1226_v36 = vadd.f32 %v1225_v29, %v2398_v38  ;;  %1501 = vadd.xlane.f32.xlu0 %v1500_v60  ;;  %v1227_v10 = vpop.f32.mrb[50].mxu1  ;;  %v1503_v61 = vadd.f32 %v1433_v17, %v1432_v9 }
 0x21c   :  { %v1358_v31 = vmax.f32 %v1224_v34, 0.0  ;;  %v1228_v18 = vadd.f32 %v1227_v10, %v2395_v59  ;;  %v1229_v62 = vpop.f32.mrb[51].mxu1 }
 0x21d   :  { %v1359_v63 = vmax.f32 %v1226_v36, 0.0  ;;  %v1230_v0 = vadd.f32 %v1229_v62, %v2398_v38  ;;  %1504 = vadd.xlane.f32.xlu1 %v1503_v61 }
 0x21e   :  { %v1434_v32 = vmul.f32 %v2405_v50, %v1358_v31  ;;  %v1360_v19 = vmax.f32 %v1228_v18, 0.0 }
 0x21f   :  { %v1435_v11 = vmul.f32 %v2409_v53, %v1359_v63  ;;  %v1361_v2 = vmax.f32 %v1230_v0, 0.0 }
 0x220   :  { %v1436_v33 = vmul.f32 %v2405_v50, %v1360_v19 }
 0x221   :  { %v1437_v3 = vmul.f32 %v2409_v53, %v1361_v2  ;;  %v1233_v4 = vpop.f32.mrb[52].mxu1  ;;  %v1506_v12 = vadd.f32 %v1435_v11, %v1434_v32 }
 0x222   :  { %v1234_v20 = vadd.f32 %v1233_v4, %v2395_v59  ;;  %v1235_v5 = vpop.f32.mrb[53].mxu1 }
 0x223   :  { %v1236_v37 = vadd.f32 %v1235_v5, %v2398_v38  ;;  %1507 = vadd.xlane.f32.xlu0 %v1506_v12  ;;  %v1237_v6 = vpop.f32.mrb[54].mxu1  ;;  %v1509_v21 = vadd.f32 %v1437_v3, %v1436_v33 }
 0x224   :  { %v1362_v39 = vmax.f32 %v1234_v20, 0.0  ;;  %v1238_v7 = vadd.f32 %v1237_v6, %v2395_v59  ;;  %v1239_v8 = vpop.f32.mrb[55].mxu1 }
 0x225   :  { %v1363_v13 = vmax.f32 %v1236_v37, 0.0  ;;  %v1240_v28 = vadd.f32 %v1239_v8, %v2398_v38  ;;  %1510 = vadd.xlane.f32.xlu1 %v1509_v21 }
 0x226   :  { %v1438_v41 = vmul.f32 %v2405_v50, %v1362_v39  ;;  %v1364_v22 = vmax.f32 %v1238_v7, 0.0 }
 0x227   :  { %v1439_v30 = vmul.f32 %v2409_v53, %v1363_v13  ;;  %v1365_v14 = vmax.f32 %v1240_v28, 0.0 }
 0x228   :  { %v1440_v42 = vmul.f32 %v2405_v50, %v1364_v22 }
 0x229   :  { %v1441_v35 = vmul.f32 %v2409_v53, %v1365_v14  ;;  %v1243_v23 = vpop.f32.mrb[56].mxu1  ;;  %v1512_v43 = vadd.f32 %v1439_v30, %v1438_v41 }
 0x22a   :  { %v1244_v44 = vadd.f32 %v1243_v23, %v2395_v59  ;;  %v1245_v45 = vpop.f32.mrb[57].mxu1 }
 0x22b   :  { %v1246_v51 = vadd.f32 %v1245_v45, %v2398_v38  ;;  %1513 = vadd.xlane.f32.xlu0 %v1512_v43  ;;  %v1247_v15 = vpop.f32.mrb[58].mxu1  ;;  %v1515_v46 = vadd.f32 %v1441_v35, %v1440_v42 }
 0x22c   :  { %v1366_v54 = vmax.f32 %v1244_v44, 0.0  ;;  %v1248_v24 = vadd.f32 %v1247_v15, %v2395_v59  ;;  %v1249_v47 = vpop.f32.mrb[59].mxu1 }
 0x22d   :  { %v1367_v48 = vmax.f32 %v1246_v51, 0.0  ;;  %v1250_v57 = vadd.f32 %v1249_v47, %v2398_v38  ;;  %1516 = vadd.xlane.f32.xlu1 %v1515_v46 }
 0x22e   :  { %v1442_v40 = vmul.f32 %v2405_v50, %v1366_v54  ;;  %v1368_v25 = vmax.f32 %v1248_v24, 0.0 }
 0x22f   :  { %v1443_v1 = vmul.f32 %v2409_v53, %v1367_v48  ;;  %v1369_v49 = vmax.f32 %v1250_v57, 0.0 }
 0x230   :  { %v1444_v52 = vmul.f32 %v2405_v50, %v1368_v25 }
 0x231   :  { %v1445_v26 = vmul.f32 %v2409_v53, %v1369_v49  ;;  %v1253_v55 = vpop.f32.mrb[60].mxu1  ;;  %v1518_v16 = vadd.f32 %v1443_v1, %v1442_v40 }
 0x232   :  { %v1254_v27 = vadd.f32 %v1253_v55, %v2395_v59  ;;  %v1255_v56 = vpop.f32.mrb[61].mxu1 }
 0x233   :  { %v1256_v9 = vadd.f32 %v1255_v56, %v2398_v38  ;;  %1519 = vadd.xlane.f32.xlu0 %v1518_v16  ;;  %v1257_v17 = vpop.f32.mrb[62].mxu1  ;;  %v1521_v58 = vadd.f32 %v1445_v26, %v1444_v52 }
 0x234   :  { %v1370_v60 = vmax.f32 %v1254_v27, 0.0  ;;  %v1258_v34 = vadd.f32 %v1257_v17, %v2395_v59  ;;  %v1259_v29 = vpop.f32.mrb[63].mxu1 }
 0x235   :  { %v1371_v36 = vmax.f32 %v1256_v9, 0.0  ;;  %v1260_v10 = vadd.f32 %v1259_v29, %v2398_v38  ;;  %1522 = vadd.xlane.f32.xlu1 %v1521_v58 }
 0x236   :  { %v1446_v61 = vmul.f32 %v2405_v50, %v1370_v60  ;;  %v1372_v31 = vmax.f32 %v1258_v34, 0.0 }
 0x237   :  { %v1447_v18 = vmul.f32 %v2409_v53, %v1371_v36  ;;  %v1373_v62 = vmax.f32 %v1260_v10, 0.0 }
 0x238   :  { %v1448_v63 = vmul.f32 %v2405_v50, %v1372_v31 }
 0x239   :  { %v1449_v0 = vmul.f32 %v2409_v53, %v1373_v62  ;;  %v1524_v32 = vadd.f32 %v1447_v18, %v1446_v61 }
 0x23b   :  { %1525 = vadd.xlane.f32.xlu0 %v1524_v32  ;;  %v1263_v19 = vpop.f32.mrb[64].mxu1  ;;  %v1527_v11 = vadd.f32 %v1449_v0, %v1448_v63 }
 0x23c   :  { %v1264_v2 = vadd.f32 %v1263_v19, %v2395_v59  ;;  %v1265_v33 = vpop.f32.mrb[65].mxu1 }
 0x23d   :  { %v1266_v3 = vadd.f32 %v1265_v33, %v2398_v38  ;;  %1528 = vadd.xlane.f32.xlu1 %v1527_v11  ;;  %v1267_v4 = vpop.f32.mrb[66].mxu1 }
 0x23e   :  { %v1374_v12 = vmax.f32 %v1264_v2, 0.0  ;;  %v1268_v20 = vadd.f32 %v1267_v4, %v2395_v59  ;;  %v1269_v5 = vpop.f32.mrb[67].mxu1 }
 0x23f   :  { %v1375_v37 = vmax.f32 %v1266_v3, 0.0  ;;  %v1270_v6 = vadd.f32 %v1269_v5, %v2398_v38 }
 0x240   :  { %v1450_v21 = vmul.f32 %v2405_v50, %v1374_v12  ;;  %v1376_v39 = vmax.f32 %v1268_v20, 0.0 }
 0x241   :  { %v1451_v7 = vmul.f32 %v2409_v53, %v1375_v37  ;;  %v1377_v8 = vmax.f32 %v1270_v6, 0.0 }
 0x242   :  { %v1452_v13 = vmul.f32 %v2405_v50, %v1376_v39 }
 0x243   :  { %v1453_v28 = vmul.f32 %v2409_v53, %v1377_v8  ;;  %v1273_v41 = vpop.f32.mrb[68].mxu1  ;;  %v1530_v22 = vadd.f32 %v1451_v7, %v1450_v21 }
 0x244   :  { %v1274_v30 = vadd.f32 %v1273_v41, %v2395_v59  ;;  %v1275_v14 = vpop.f32.mrb[69].mxu1 }
 0x245   :  { %v1276_v42 = vadd.f32 %v1275_v14, %v2398_v38  ;;  %v1277_v35 = vpop.f32.mrb[70].mxu1  ;;  %1531 = vadd.xlane.f32.xlu0 %v1530_v22  ;;  %v1533_v23 = vadd.f32 %v1453_v28, %v1452_v13 }
 0x246   :  { %v1378_v43 = vmax.f32 %v1274_v30, 0.0  ;;  %v1278_v44 = vadd.f32 %v1277_v35, %v2395_v59  ;;  %v1279_v45 = vpop.f32.mrb[71].mxu1 }
 0x247   :  { %v1379_v51 = vmax.f32 %v1276_v42, 0.0  ;;  %v1280_v15 = vadd.f32 %v1279_v45, %v2398_v38  ;;  %1534 = vadd.xlane.f32.xlu1 %v1533_v23 }
 0x248   :  { %v1454_v46 = vmul.f32 %v2405_v50, %v1378_v43  ;;  %v1380_v54 = vmax.f32 %v1278_v44, 0.0 }
 0x249   :  { %v1455_v24 = vmul.f32 %v2409_v53, %v1379_v51  ;;  %v1381_v47 = vmax.f32 %v1280_v15, 0.0 }
 0x24a   :  { %v1456_v48 = vmul.f32 %v2405_v50, %v1380_v54 }
 0x24b   :  { %v1457_v57 = vmul.f32 %v2409_v53, %v1381_v47  ;;  %v1283_v40 = vpop.f32.mrb[72].mxu1  ;;  %v1536_v25 = vadd.f32 %v1455_v24, %v1454_v46 }
 0x24c   :  { %v1284_v1 = vadd.f32 %v1283_v40, %v2395_v59  ;;  %v1285_v49 = vpop.f32.mrb[73].mxu1 }
 0x24d   :  { %v1286_v52 = vadd.f32 %v1285_v49, %v2398_v38  ;;  %v1287_v26 = vpop.f32.mrb[74].mxu1  ;;  %1537 = vadd.xlane.f32.xlu0 %v1536_v25  ;;  %v1539_v55 = vadd.f32 %v1457_v57, %v1456_v48 }
 0x24e   :  { %v1382_v16 = vmax.f32 %v1284_v1, 0.0  ;;  %v1288_v27 = vadd.f32 %v1287_v26, %v2395_v59  ;;  %v1289_v56 = vpop.f32.mrb[75].mxu1 }
 0x24f   :  { %v1383_v9 = vmax.f32 %v1286_v52, 0.0  ;;  %v1290_v17 = vadd.f32 %v1289_v56, %v2398_v38  ;;  %1540 = vadd.xlane.f32.xlu1 %v1539_v55 }
 0x250   :  { %v1458_v58 = vmul.f32 %v2405_v50, %v1382_v16  ;;  %v1384_v60 = vmax.f32 %v1288_v27, 0.0 }
 0x251   :  { %v1459_v34 = vmul.f32 %v2409_v53, %v1383_v9  ;;  %v1385_v29 = vmax.f32 %v1290_v17, 0.0 }
 0x252   :  { %v1460_v36 = vmul.f32 %v2405_v50, %v1384_v60 }
 0x253   :  { %v1461_v10 = vmul.f32 %v2409_v53, %v1385_v29  ;;  %v1293_v61 = vpop.f32.mrb[76].mxu1  ;;  %v1542_v31 = vadd.f32 %v1459_v34, %v1458_v58 }
 0x254   :  { %v1294_v18 = vadd.f32 %v1293_v61, %v2395_v59  ;;  %v1295_v62 = vpop.f32.mrb[77].mxu1 }
 0x255   :  { %v1296_v63 = vadd.f32 %v1295_v62, %v2398_v38  ;;  %v1297_v0 = vpop.f32.mrb[78].mxu1  ;;  %1543 = vadd.xlane.f32.xlu0 %v1542_v31  ;;  %v1545_v32 = vadd.f32 %v1461_v10, %v1460_v36 }
 0x256   :  { %v1386_v19 = vmax.f32 %v1294_v18, 0.0  ;;  %v1298_v11 = vadd.f32 %v1297_v0, %v2395_v59  ;;  %v1299_v2 = vpop.f32.mrb[79].mxu1 }
 0x257   :  { %v1387_v33 = vmax.f32 %v1296_v63, 0.0  ;;  %v1300_v3 = vadd.f32 %v1299_v2, %v2398_v38  ;;  %1546 = vadd.xlane.f32.xlu1 %v1545_v32 }
 0x258   :  { %v1462_v4 = vmul.f32 %v2405_v50, %v1386_v19  ;;  %v1388_v12 = vmax.f32 %v1298_v11, 0.0 }
 0x259   :  { %v1463_v20 = vmul.f32 %v2409_v53, %v1387_v33  ;;  %v1389_v5 = vmax.f32 %v1300_v3, 0.0 }
 0x25a   :  { %v1464_v37 = vmul.f32 %v2405_v50, %v1388_v12 }
 0x25b   :  { %v1465_v6 = vmul.f32 %v2409_v53, %v1389_v5  ;;  %v1303_v21 = vpop.f32.mrb[80].mxu1  ;;  %v1548_v39 = vadd.f32 %v1463_v20, %v1462_v4 }
 0x25c   :  { %v1304_v7 = vadd.f32 %v1303_v21, %v2395_v59  ;;  %v1305_v8 = vpop.f32.mrb[81].mxu1 }
 0x25d   :  { %v1306_v13 = vadd.f32 %v1305_v8, %v2398_v38  ;;  %v1307_v28 = vpop.f32.mrb[82].mxu1  ;;  %1549 = vadd.xlane.f32.xlu0 %v1548_v39  ;;  %v1551_v41 = vadd.f32 %v1465_v6, %v1464_v37 }
 0x25e   :  { %v1390_v22 = vmax.f32 %v1304_v7, 0.0  ;;  %v1308_v30 = vadd.f32 %v1307_v28, %v2395_v59  ;;  %v1309_v14 = vpop.f32.mrb[83].mxu1 }
 0x25f   :  { %v1391_v42 = vmax.f32 %v1306_v13, 0.0  ;;  %v1310_v35 = vadd.f32 %v1309_v14, %v2398_v38  ;;  %1552 = vadd.xlane.f32.xlu1 %v1551_v41 }
 0x260   :  { %v1466_v23 = vmul.f32 %v2405_v50, %v1390_v22  ;;  %v1392_v43 = vmax.f32 %v1308_v30, 0.0 }
 0x261   :  { %v1467_v44 = vmul.f32 %v2409_v53, %v1391_v42  ;;  %v1393_v45 = vmax.f32 %v1310_v35, 0.0 }
 0x262   :  { %v1468_v51 = vmul.f32 %v2405_v50, %v1392_v43 }
 0x263   :  { %v1469_v15 = vmul.f32 %v2409_v53, %v1393_v45  ;;  %v1313_v46 = vpop.f32.mrb[84].mxu1  ;;  %v1554_v54 = vadd.f32 %v1467_v44, %v1466_v23 }
 0x264   :  { %v1314_v24 = vadd.f32 %v1313_v46, %v2395_v59  ;;  %v1315_v47 = vpop.f32.mrb[85].mxu1 }
 0x265   :  { %v1316_v48 = vadd.f32 %v1315_v47, %v2398_v38  ;;  %v1317_v57 = vpop.f32.mrb[86].mxu1  ;;  %1555 = vadd.xlane.f32.xlu0 %v1554_v54  ;;  %v1557_v40 = vadd.f32 %v1469_v15, %v1468_v51 }
 0x266   :  { %v1394_v25 = vmax.f32 %v1314_v24, 0.0  ;;  %v1318_v1 = vadd.f32 %v1317_v57, %v2395_v59  ;;  %v1319_v49 = vpop.f32.mrb[87].mxu1 }
 0x267   :  { %v1395_v52 = vmax.f32 %v1316_v48, 0.0  ;;  %v1320_v26 = vadd.f32 %v1319_v49, %v2398_v38  ;;  %1558 = vadd.xlane.f32.xlu1 %v1557_v40 }
 0x268   :  { %v1470_v55 = vmul.f32 %v2405_v50, %v1394_v25  ;;  %v1396_v16 = vmax.f32 %v1318_v1, 0.0 }
 0x269   :  { %v1471_v27 = vmul.f32 %v2409_v53, %v1395_v52  ;;  %v1397_v56 = vmax.f32 %v1320_v26, 0.0 }
 0x26a   :  { %v1472_v9 = vmul.f32 %v2405_v50, %v1396_v16 }
 0x26b   :  { %v1473_v17 = vmul.f32 %v2409_v53, %v1397_v56  ;;  %v1323_v58 = vpop.f32.mrb[88].mxu1  ;;  %v1560_v60 = vadd.f32 %v1471_v27, %v1470_v55 }
 0x26c   :  { %v1324_v34 = vadd.f32 %v1323_v58, %v2395_v59  ;;  %v1325_v29 = vpop.f32.mrb[89].mxu1 }
 0x26d   :  { %v1326_v36 = vadd.f32 %v1325_v29, %v2398_v38  ;;  %v1327_v10 = vpop.f32.mrb[90].mxu1  ;;  %1561 = vadd.xlane.f32.xlu0 %v1560_v60  ;;  %v1563_v61 = vadd.f32 %v1473_v17, %v1472_v9 }
 0x26e   :  { %v1398_v31 = vmax.f32 %v1324_v34, 0.0  ;;  %v1328_v18 = vadd.f32 %v1327_v10, %v2395_v59  ;;  %v1329_v62 = vpop.f32.mrb[91].mxu1 }
 0x26f   :  { %v1399_v63 = vmax.f32 %v1326_v36, 0.0  ;;  %v1330_v0 = vadd.f32 %v1329_v62, %v2398_v38  ;;  %1564 = vadd.xlane.f32.xlu1 %v1563_v61 }
 0x270   :  { %v1474_v32 = vmul.f32 %v2405_v50, %v1398_v31  ;;  %v1400_v19 = vmax.f32 %v1328_v18, 0.0 }
 0x271   :  { %v1475_v11 = vmul.f32 %v2409_v53, %v1399_v63  ;;  %v1401_v2 = vmax.f32 %v1330_v0, 0.0 }
 0x272   :  { %v1476_v33 = vmul.f32 %v2405_v50, %v1400_v19 }
 0x273   :  { %v1477_v3 = vmul.f32 %v2409_v53, %v1401_v2  ;;  %v1333_v4 = vpop.f32.mrb[92].mxu1  ;;  %v1566_v12 = vadd.f32 %v1475_v11, %v1474_v32 }
 0x274   :  { %v1334_v20 = vadd.f32 %v1333_v4, %v2395_v59  ;;  %v1335_v5 = vpop.f32.mrb[93].mxu1 }
 0x275   :  { %v1336_v37 = vadd.f32 %v1335_v5, %v2398_v38  ;;  %v1337_v6 = vpop.f32.mrb[94].mxu1  ;;  %1567 = vadd.xlane.f32.xlu0 %v1566_v12  ;;  %v1569_v21 = vadd.f32 %v1477_v3, %v1476_v33 }
 0x276   :  { %v1402_v39 = vmax.f32 %v1334_v20, 0.0  ;;  %v1338_v7 = vadd.f32 %v1337_v6, %v2395_v59  ;;  %v1339_v8 = vpop.f32.mrb[95].mxu1  ;;  %v2540_v59 = vld [vmem:[#allocation2] ss:$0 sm:$0xff] }
 0x277   :  { %v1403_v13 = vmax.f32 %v1336_v37, 0.0  ;;  %v1340_v28 = vadd.f32 %v1339_v8, %v2398_v38  ;;  %1570 = vadd.xlane.f32.xlu1 %v1569_v21 }
 0x278   :  { %v1478_v41 = vmul.f32 %v2405_v50, %v1402_v39  ;;  %v1404_v22 = vmax.f32 %v1338_v7, 0.0 }
 0x279   :  { %v1479_v30 = vmul.f32 %v2409_v53, %v1403_v13  ;;  %v1405_v14 = vmax.f32 %v1340_v28, 0.0 }
 0x27a   :  { %v1480_v42 = vmul.f32 %v2405_v50, %v1404_v22 }
 0x27b   :  { %v1481_v35 = vmul.f32 %v2409_v53, %v1405_v14  ;;  %v1572_v23 = vadd.f32 %v1479_v30, %v1478_v41 }
 0x27d   :  { %1573 = vadd.xlane.f32.xlu0 %v1572_v23  ;;  %v1575_v43 = vadd.f32 %v1481_v35, %v1480_v42 }
 0x27f   :  { %1576 = vadd.xlane.f32.xlu1 %v1575_v43 }
 0x290   :  { %v1484_v44 = vpop.xlane.xlu0 %1483 }
 0x291   :  { %v1585_v38 = vadd.f32 %v2540_v59, %v1484_v44 }
 0x293   :  { %1618 = vst.msk [vmem:[%s2711_s9] sm:$0xff] %vm1617_vm4, %v1585_v38 }
 0x294   :  { %v1487_v45 = vpop.xlane.xlu0 %1486 }
 0x295   :  { %v1586_v50 = vadd.f32 %v2540_v59, %v1487_v45 }
 0x297   :  { %1619 = vst.msk [vmem:[%s2711_s9 + $0x8] sm:$0xff] %vm1617_vm4, %v1586_v50 }
 0x298   :  { %v1490_v53 = vpop.xlane.xlu1 %1489 }
 0x299   :  { %v1587_v51 = vadd.f32 %v2540_v59, %v1490_v53 }
 0x29b   :  { %1620 = vst.msk [vmem:[%s2711_s9 + $0x10] sm:$0xff] %vm1617_vm4, %v1587_v51 }
 0x29c   :  { %v1493_v15 = vpop.xlane.xlu1 %1492 }
 0x29d   :  { %v1588_v46 = vadd.f32 %v2540_v59, %v1493_v15 }
 0x29f   :  { %1621 = vst.msk [vmem:[%s2711_s9 + $0x18] sm:$0xff] %vm1617_vm4, %v1588_v46 }
 0x2a0   :  { %v1496_v54 = vpop.xlane.xlu0 %1495 }
 0x2a1   :  { %v1589_v24 = vadd.f32 %v2540_v59, %v1496_v54 }
 0x2a2   :  { %v1499_v47 = vpop.xlane.xlu1 %1498 }
 0x2a3   :  { %1622 = vst.msk [vmem:[%s2711_s9 + $0x20] sm:$0xff] %vm1617_vm4, %v1589_v24  ;;  %v1590_v48 = vadd.f32 %v2540_v59, %v1499_v47 }
 0x2a5   :  { %1623 = vst.msk [vmem:[%s2711_s9 + $0x28] sm:$0xff] %vm1617_vm4, %v1590_v48 }
 0x2a8   :  { %v1502_v57 = vpop.xlane.xlu0 %1501 }
 0x2a9   :  { %v1591_v40 = vadd.f32 %v2540_v59, %v1502_v57 }
 0x2aa   :  { %v1505_v25 = vpop.xlane.xlu1 %1504 }
 0x2ab   :  { %1624 = vst.msk [vmem:[%s2711_s9 + $0x30] sm:$0xff] %vm1617_vm4, %v1591_v40  ;;  %v1592_v1 = vadd.f32 %v2540_v59, %v1505_v25 }
 0x2ad   :  { %1625 = vst.msk [vmem:[%s2711_s9 + $0x38] sm:$0xff] %vm1617_vm4, %v1592_v1 }
 0x2b0   :  { %v1508_v49 = vpop.xlane.xlu0 %1507 }
 0x2b1   :  { %v1593_v52 = vadd.f32 %v2540_v59, %v1508_v49 }
 0x2b2   :  { %v1511_v26 = vpop.xlane.xlu1 %1510 }
 0x2b3   :  { %1626 = vst.msk [vmem:[%s2711_s9 + $0x40] sm:$0xff] %vm1617_vm4, %v1593_v52  ;;  %v1594_v55 = vadd.f32 %v2540_v59, %v1511_v26 }
 0x2b5   :  { %1627 = vst.msk [vmem:[%s2711_s9 + $0x48] sm:$0xff] %vm1617_vm4, %v1594_v55 }
 0x2b8   :  { %v1514_v16 = vpop.xlane.xlu0 %1513 }
 0x2b9   :  { %v1595_v27 = vadd.f32 %v2540_v59, %v1514_v16 }
 0x2ba   :  { %v1517_v56 = vpop.xlane.xlu1 %1516 }
 0x2bb   :  { %1628 = vst.msk [vmem:[%s2711_s9 + $0x50] sm:$0xff] %vm1617_vm4, %v1595_v27  ;;  %v1596_v9 = vadd.f32 %v2540_v59, %v1517_v56 }
 0x2bd   :  { %1629 = vst.msk [vmem:[%s2711_s9 + $0x58] sm:$0xff] %vm1617_vm4, %v1596_v9 }
 0x2c0   :  { %v1520_v17 = vpop.xlane.xlu0 %1519 }
 0x2c1   :  { %v1597_v58 = vadd.f32 %v2540_v59, %v1520_v17 }
 0x2c2   :  { %v1523_v60 = vpop.xlane.xlu1 %1522 }
 0x2c3   :  { %1630 = vst.msk [vmem:[%s2711_s9 + $0x60] sm:$0xff] %vm1617_vm4, %v1597_v58  ;;  %v1598_v34 = vadd.f32 %v2540_v59, %v1523_v60 }
 0x2c5   :  { %1631 = vst.msk [vmem:[%s2711_s9 + $0x68] sm:$0xff] %vm1617_vm4, %v1598_v34 }
 0x2c8   :  { %v1526_v29 = vpop.xlane.xlu0 %1525 }
 0x2c9   :  { %v1599_v36 = vadd.f32 %v2540_v59, %v1526_v29 }
 0x2ca   :  { %v1529_v10 = vpop.xlane.xlu1 %1528 }
 0x2cb   :  { %1632 = vst.msk [vmem:[%s2711_s9 + $0x70] sm:$0xff] %vm1617_vm4, %v1599_v36  ;;  %v1600_v61 = vadd.f32 %v2540_v59, %v1529_v10 }
 0x2cd   :  { %1633 = vst.msk [vmem:[%s2711_s9 + $0x78] sm:$0xff] %vm1617_vm4, %v1600_v61 }
 0x2d2   :  { %v1532_v31 = vpop.xlane.xlu0 %1531 }
 0x2d3   :  { %v1601_v18 = vadd.f32 %v2540_v59, %v1532_v31 }
 0x2d4   :  { %v1535_v62 = vpop.xlane.xlu1 %1534 }
 0x2d5   :  { %1634 = vst.msk [vmem:[%s2711_s9 + $0x80] sm:$0xff] %vm1617_vm4, %v1601_v18  ;;  %v1602_v63 = vadd.f32 %v2540_v59, %v1535_v62 }
 0x2d7   :  { %1635 = vst.msk [vmem:[%s2711_s9 + $0x88] sm:$0xff] %vm1617_vm4, %v1602_v63 }
 0x2da   :  { %v1538_v0 = vpop.xlane.xlu0 %1537 }
 0x2db   :  { %v1603_v32 = vadd.f32 %v2540_v59, %v1538_v0 }
 0x2dc   :  { %v1541_v19 = vpop.xlane.xlu1 %1540 }
 0x2dd   :  { %1636 = vst.msk [vmem:[%s2711_s9 + $0x90] sm:$0xff] %vm1617_vm4, %v1603_v32  ;;  %v1604_v11 = vadd.f32 %v2540_v59, %v1541_v19 }
 0x2df   :  { %1637 = vst.msk [vmem:[%s2711_s9 + $0x98] sm:$0xff] %vm1617_vm4, %v1604_v11 }
 0x2e2   :  { %v1544_v2 = vpop.xlane.xlu0 %1543 }
 0x2e3   :  { %v1605_v33 = vadd.f32 %v2540_v59, %v1544_v2 }
 0x2e4   :  { %v1547_v3 = vpop.xlane.xlu1 %1546 }
 0x2e5   :  { %1638 = vst.msk [vmem:[%s2711_s9 + $0xa0] sm:$0xff] %vm1617_vm4, %v1605_v33  ;;  %v1606_v4 = vadd.f32 %v2540_v59, %v1547_v3 }
 0x2e7   :  { %1639 = vst.msk [vmem:[%s2711_s9 + $0xa8] sm:$0xff] %vm1617_vm4, %v1606_v4 }
 0x2ea   :  { %v1550_v12 = vpop.xlane.xlu0 %1549 }
 0x2eb   :  { %v1607_v20 = vadd.f32 %v2540_v59, %v1550_v12 }
 0x2ec   :  { %v1553_v5 = vpop.xlane.xlu1 %1552 }
 0x2ed   :  { %1640 = vst.msk [vmem:[%s2711_s9 + $0xb0] sm:$0xff] %vm1617_vm4, %v1607_v20  ;;  %v1608_v37 = vadd.f32 %v2540_v59, %v1553_v5 }
 0x2ef   :  { %1641 = vst.msk [vmem:[%s2711_s9 + $0xb8] sm:$0xff] %vm1617_vm4, %v1608_v37 }
 0x2f2   :  { %v1556_v6 = vpop.xlane.xlu0 %1555 }
 0x2f3   :  { %v1609_v21 = vadd.f32 %v2540_v59, %v1556_v6 }
 0x2f4   :  { %v1559_v39 = vpop.xlane.xlu1 %1558 }
 0x2f5   :  { %1642 = vst.msk [vmem:[%s2711_s9 + $0xc0] sm:$0xff] %vm1617_vm4, %v1609_v21  ;;  %v1610_v7 = vadd.f32 %v2540_v59, %v1559_v39 }
 0x2f7   :  { %1643 = vst.msk [vmem:[%s2711_s9 + $0xc8] sm:$0xff] %vm1617_vm4, %v1610_v7 }
 0x2fa   :  { %v1562_v8 = vpop.xlane.xlu0 %1561 }
 0x2fb   :  { %v1611_v13 = vadd.f32 %v2540_v59, %v1562_v8 }
 0x2fc   :  { %v1565_v28 = vpop.xlane.xlu1 %1564 }
 0x2fd   :  { %1644 = vst.msk [vmem:[%s2711_s9 + $0xd0] sm:$0xff] %vm1617_vm4, %v1611_v13  ;;  %v1612_v41 = vadd.f32 %v2540_v59, %v1565_v28 }
 0x2ff   :  { %1645 = vst.msk [vmem:[%s2711_s9 + $0xd8] sm:$0xff] %vm1617_vm4, %v1612_v41 }
 0x302   :  { %v1568_v22 = vpop.xlane.xlu0 %1567 }
 0x303   :  { %v1613_v30 = vadd.f32 %v2540_v59, %v1568_v22 }
 0x304   :  { %v1571_v14 = vpop.xlane.xlu1 %1570 }
 0x305   :  { %1646 = vst.msk [vmem:[%s2711_s9 + $0xe0] sm:$0xff] %vm1617_vm4, %v1613_v30  ;;  %v1614_v42 = vadd.f32 %v2540_v59, %v1571_v14 }
 0x307   :  { %1647 = vst.msk [vmem:[%s2711_s9 + $0xe8] sm:$0xff] %vm1617_vm4, %v1614_v42 }
 0x30a   :  { %v1574_v35 = vpop.xlane.xlu0 %1573 }
 0x30b   :  { %v1615_v23 = vadd.f32 %v2540_v59, %v1574_v35 }
 0x30c   :  { %v1577_v43 = vpop.xlane.xlu1 %1576 }
 0x30d   :  { %1648 = vst.msk [vmem:[%s2711_s9 + $0xf0] sm:$0xff] %vm1617_vm4, %v1615_v23  ;;  %v1616_v44 = vadd.f32 %v2540_v59, %v1577_v43 }
 0x30f   :  { %1649 = vst.msk [vmem:[%s2711_s9 + $0xf8] sm:$0xff] %vm1617_vm4, %v1616_v44 }

</bundles_post_ra>
